<compile_context>
chip_gen: v7x
topology: tpu7x:2x2x1
jax: 0.10.0
libtpu: 0.0.40
codegen_flags: <defaults>
</compile_context>

<pallas_src>
import functools
import numpy as np
import jax
import jax.numpy as jnp
from jax.experimental import pallas as pl
from jax.experimental.pallas import tpu as pltpu


def _leaky(x, leakiness):
    if 0.0 <= leakiness <= 1.0:
        # max(x, l*x) == leaky relu for 0 <= l <= 1; cheaper than where/select.
        return jnp.maximum(x, leakiness * x)
    return jnp.where(x >= 0, x, leakiness * x)


def _block_diag2(w):
    """(ci, co) -> (2*ci, 2*co) block-diagonal [[w, 0], [0, w]]."""
    ci, co = w.shape
    z = jnp.zeros((ci, co), w.dtype)
    top = jnp.concatenate([w, z], axis=1)
    bot = jnp.concatenate([z, w], axis=1)
    return jnp.concatenate([top, bot], axis=0)


# --------------------------------------------------------------------------
# Fused per-layer kernel: reps x resnet block + LeakyReLU + 2x2 stride-2 conv
# --------------------------------------------------------------------------
def _encoder_layer_kernel(x_ref, *rest, reps, leakiness, w_half, th, cout):
    o_ref = rest[-1]
    w_refs = rest[:-1]          # 3*reps block-diag resnet mats + 2 conv mats
    x = x_ref[0]                # (M, 2*cin), M = th * w_half  (w-pair packed)

    # resnet blocks: out = x @ Wnin + leaky(leaky(x) @ W1) @ W2
    # (block-diagonal weights act on both packed sites at once)
    for r in range(reps):
        w_nin = w_refs[3 * r][...]
        w_1 = w_refs[3 * r + 1][...]
        w_2 = w_refs[3 * r + 2][...]
        xl = _leaky(x, leakiness)
        sc = jnp.dot(x, w_nin, preferred_element_type=jnp.float32)
        t = jnp.dot(xl, w_1, preferred_element_type=jnp.float32)
        t = _leaky(t, leakiness)
        t = jnp.dot(t, w_2, preferred_element_type=jnp.float32)
        x = sc + t

    # LeakyReLU + 2x2 stride-2 conv.  The kw-parity is already packed into the
    # lane dim, so the conv is two matmuls (one per kh) followed by selecting
    # even-h / odd-h halves with a static sublane slice and adding.
    z = _leaky(x, leakiness)                                    # (M, 2*c_last)
    wk0 = w_refs[3 * reps][...]                                 # (2*c_last, cout)
    wk1 = w_refs[3 * reps + 1][...]
    y0 = jnp.dot(z, wk0, preferred_element_type=jnp.float32)    # (M, cout)
    y1 = jnp.dot(z, wk1, preferred_element_type=jnp.float32)
    w_full = 2 * w_half
    y0r = y0.reshape(th // 2, w_full, cout)    # row-dim split; lane dim unchanged
    y1r = y1.reshape(th // 2, w_full, cout)
    out3 = y0r[:, :w_half, :] + y1r[:, w_half:, :]   # (th//2, w_half, cout)
    o_ref[0] = out3.astype(o_ref.dtype)


def _pick_tile_h(n, h, w, c_pack, bytes_cap=4 * 1024 * 1024):
    """Largest even divisor of h whose VMEM block footprint stays under cap
    (v7x-safe), preferring >= 2 total grid steps so both v7x TCs get work."""
    cands = [t for t in range(2, h + 1, 2) if h % t == 0]
    assert cands, f"H={h} must have an even divisor >= 2"
    lanes = ((max(c_pack, 1) + 127) // 128) * 128      # VMEM lane padding
    def blk_bytes(t):
        return t * (w // 2) * lanes * 4 * 4            # in + out, double-buffered
    fitting = [t for t in cands if blk_bytes(t) <= bytes_cap] or [cands[0]]
    multi = [t for t in fitting if n * (h // t) >= 2]
    return max(multi if multi else fitting)


def encoder_layer(x_nhwc, resnet_ws, w_conv, leakiness):
    """x_nhwc: (N, H, W, Cin) -> (N, H//2, W//2, Cout)."""
    n, h, w, c = x_nhwc.shape
    assert h % 2 == 0 and w % 2 == 0, "spatial dims must be even for 2x2/2 conv"
    cout = w_conv.shape[-1]
    c_last = w_conv.shape[-2]
    reps = len(resnet_ws)

    th = _pick_tile_h(n, h, w, 2 * c)
    g = n * (h // th)
    w_half = w // 2
    m = th * w_half

    # Free reshape: pack horizontally adjacent site pairs into the lane dim.
    xp = x_nhwc.reshape(g, m, 2 * c)

    wlist = []
    for rb in resnet_ws:
        wlist += [_block_diag2(rb["w_nin"]), _block_diag2(rb["w1"]),
                  _block_diag2(rb["w2"])]
    wlist.append(jnp.concatenate([w_conv[0, 0], w_conv[0, 1]], axis=0))  # kh=0
    wlist.append(jnp.concatenate([w_conv[1, 0], w_conv[1, 1]], axis=0))  # kh=1

    in_specs = [pl.BlockSpec((1, m, 2 * c), lambda i: (i, 0, 0))]
    in_specs += [pl.BlockSpec(wm.shape, lambda i: (0, 0)) for wm in wlist]
    out_specs = pl.BlockSpec((1, th // 2, w_half, cout), lambda i: (i, 0, 0, 0))

    # Advisory cost estimate so XLA can schedule/overlap the custom call.
    rows = g * m
    flops = 0
    for rb in resnet_ws:
        ci2, co2 = 2 * rb["w_nin"].shape[0], 2 * rb["w_nin"].shape[1]
        flops += 2 * rows * ci2 * co2 * 2 + 2 * rows * co2 * co2
    flops += 2 * rows * (2 * c_last) * cout * 2
    bytes_accessed = 4 * (xp.size + g * (th // 2) * w_half * cout
                          + sum(int(np.prod(wm.shape)) for wm in wlist))

    kern = functools.partial(_encoder_layer_kernel, reps=reps,
                             leakiness=leakiness, w_half=w_half, th=th,
                             cout=cout)
    out = pl.pallas_call(
        kern,
        out_shape=jax.ShapeDtypeStruct((g, th // 2, w_half, cout), jnp.float32),
        grid=(g,),
        in_specs=in_specs,
        out_specs=out_specs,
        compiler_params=pltpu.CompilerParams(
            dimension_semantics=("parallel",),
            vmem_limit_bytes=32 * 1024 * 1024),
        cost_estimate=pl.CostEstimate(flops=int(flops), transcendentals=0,
                                      bytes_accessed=int(bytes_accessed)),
    )(xp, *wlist)
    return out.reshape(n, h // 2, w_half, cout)


# --------------------------------------------------------------------------
# Parameter init (deterministic, mirrors Encoder.__init__ shape bookkeeping)
# --------------------------------------------------------------------------
def init_encoder_params(key, reps, n_layers, n_in_start=1):
    params = []
    cin, cout = n_in_start, n_in_start          # n_in, n_out = (1, 1)
    for spec in n_layers:
        layer = {"resnet": []}
        for _ in range(reps):
            key, k1, k2, k3 = jax.random.split(key, 4)
            layer["resnet"].append({
                "w_nin": jax.random.normal(k1, (cin, cout), jnp.float32) / np.sqrt(cin),
                "w1":    jax.random.normal(k2, (cin, cout), jnp.float32) / np.sqrt(cin),
                "w2":    jax.random.normal(k3, (cout, cout), jnp.float32) / np.sqrt(cout),
            })
            cin = cout
        cout = spec[1]
        key, kc = jax.random.split(key)
        layer["w_conv"] = jax.random.normal(
            kc, (2, 2, cin, cout), jnp.float32) / np.sqrt(4 * cin)
        params.append(layer)
        cin = cout
    return params


# --------------------------------------------------------------------------
# Forward pass (Encoder.forward, return_blocks=False)
# --------------------------------------------------------------------------
def encoder_forward(x_nchw, params, leakiness):
    x = jnp.transpose(x_nchw, (0, 2, 3, 1))     # NHWC
    for layer in params:
        x = encoder_layer(x, layer["resnet"], layer["w_conv"], leakiness)
    return jnp.transpose(x, (0, 3, 1, 2))       # back to NCHW


# Pure-JAX reference for validation
def encoder_reference(x_nchw, params, leakiness):
    x = jnp.transpose(x_nchw, (0, 2, 3, 1))     # NHWC
    for layer in params:
        for rb in layer["resnet"]:
            sc = x @ rb["w_nin"]
            t = _leaky(x, leakiness) @ rb["w1"]
            t = _leaky(t, leakiness) @ rb["w2"]
            x = sc + t
        x = _leaky(x, leakiness)
        x = jax.lax.conv_general_dilated(
            x, layer["w_conv"], window_strides=(2, 2), padding="VALID",
            dimension_numbers=("NHWC", "HWIO", "NHWC"))
    return jnp.transpose(x, (0, 3, 1, 2))


if __name__ == "__main__":
    # Encoder(dimension=2, reps=2, n_layers=[(1, 8), (8, 16)], leakiness=0.1)
    reps = 2
    leakiness = 0.1
    n_layers = [(1, 8), (8, 16)]

    key = jax.random.PRNGKey(0)
    kx, kp = jax.random.split(key)
    x = jax.random.normal(kx, (2, 1, 16, 16), jnp.float32)   # NCHW, n_in starts at 1

    params = init_encoder_params(kp, reps, n_layers)

    fwd = jax.jit(functools.partial(encoder_forward, leakiness=leakiness))
    out = jax.block_until_ready(fwd(x, params))

    ref = encoder_reference(x, params, leakiness)
    assert out.shape == (2, 16, 4, 4), out.shape
    assert bool(jnp.allclose(out, ref, atol=1e-4, rtol=1e-4)), "mismatch vs reference"
    print("KERNEL_OK")
</pallas_src>

<mosaic_0001>
module attributes {stable_mosaic.version = 11 : i64} {
  func.func @_encoder_layer_kernel(%arg0: i32, %arg1: memref<1x128x2xf32, #tpu.memory_space<vmem>>, %arg2: memref<2x2xf32, #tpu.memory_space<vmem>>, %arg3: memref<2x2xf32, #tpu.memory_space<vmem>>, %arg4: memref<2x2xf32, #tpu.memory_space<vmem>>, %arg5: memref<2x2xf32, #tpu.memory_space<vmem>>, %arg6: memref<2x2xf32, #tpu.memory_space<vmem>>, %arg7: memref<2x2xf32, #tpu.memory_space<vmem>>, %arg8: memref<2x8xf32, #tpu.memory_space<vmem>>, %arg9: memref<2x8xf32, #tpu.memory_space<vmem>>, %arg10: memref<1x8x8x8xf32, #tpu.memory_space<vmem>>) attributes {dimension_semantics = [#tpu.dimension_semantics<parallel>], iteration_bounds = array<i64: 2>, scalar_prefetch = 0 : i64, scratch_operands = 0 : i64, tpu.core_type = #tpu.core_type<tc>, window_params = [{transform_indices = @transform_0, window_bounds = array<i64: 1, 128, 2>}, {pipeline_mode = #tpu.pipeline_mode<synchronous>, transform_indices = @transform_1, window_bounds = array<i64: 2, 2>}, {pipeline_mode = #tpu.pipeline_mode<synchronous>, transform_indices = @transform_2, window_bounds = array<i64: 2, 2>}, {pipeline_mode = #tpu.pipeline_mode<synchronous>, transform_indices = @transform_3, window_bounds = array<i64: 2, 2>}, {pipeline_mode = #tpu.pipeline_mode<synchronous>, transform_indices = @transform_4, window_bounds = array<i64: 2, 2>}, {pipeline_mode = #tpu.pipeline_mode<synchronous>, transform_indices = @transform_5, window_bounds = array<i64: 2, 2>}, {pipeline_mode = #tpu.pipeline_mode<synchronous>, transform_indices = @transform_6, window_bounds = array<i64: 2, 2>}, {pipeline_mode = #tpu.pipeline_mode<synchronous>, transform_indices = @transform_7, window_bounds = array<i64: 2, 8>}, {pipeline_mode = #tpu.pipeline_mode<synchronous>, transform_indices = @transform_8, window_bounds = array<i64: 2, 8>}, {transform_indices = @transform_9, window_bounds = array<i64: 1, 8, 8, 8>}]} {
    %c0 = arith.constant 0 : index
    %c0_0 = arith.constant 0 : index
    %c0_1 = arith.constant 0 : index
    %0 = vector.load %arg1[%c0, %c0_0, %c0_1] : memref<1x128x2xf32, #tpu.memory_space<vmem>>, vector<1x128x2xf32>
    %1 = vector.shape_cast %0 : vector<1x128x2xf32> to vector<128x2xf32>
    %c0_2 = arith.constant 0 : index
    %c0_3 = arith.constant 0 : index
    %2 = vector.load %arg2[%c0_2, %c0_3] : memref<2x2xf32, #tpu.memory_space<vmem>>, vector<2x2xf32>
    %c0_4 = arith.constant 0 : index
    %c0_5 = arith.constant 0 : index
    %3 = vector.load %arg3[%c0_4, %c0_5] : memref<2x2xf32, #tpu.memory_space<vmem>>, vector<2x2xf32>
    %c0_6 = arith.constant 0 : index
    %c0_7 = arith.constant 0 : index
    %4 = vector.load %arg4[%c0_6, %c0_7] : memref<2x2xf32, #tpu.memory_space<vmem>>, vector<2x2xf32>
    %cst = arith.constant 1.000000e-01 : f32
    %5 = vector.broadcast %cst : f32 to vector<128x2xf32>
    %6 = arith.mulf %5, %1 : vector<128x2xf32>
    %7 = arith.maximumf %1, %6 : vector<128x2xf32>
    %cst_8 = arith.constant dense<0.000000e+00> : vector<128x2xf32>
    %8 = tpu.matmul %1, %2, %cst_8 {dimension_numbers = #tpu.dot_dimension_numbers<[1], [0], [0], [1], [0, 0, 1, 1], [], []>} : vector<128x2xf32>, vector<2x2xf32>, vector<128x2xf32> -> vector<128x2xf32>
    %cst_9 = arith.constant dense<0.000000e+00> : vector<128x2xf32>
    %9 = tpu.matmul %7, %3, %cst_9 {dimension_numbers = #tpu.dot_dimension_numbers<[1], [0], [0], [1], [0, 0, 1, 1], [], []>} : vector<128x2xf32>, vector<2x2xf32>, vector<128x2xf32> -> vector<128x2xf32>
    %cst_10 = arith.constant 1.000000e-01 : f32
    %10 = vector.broadcast %cst_10 : f32 to vector<128x2xf32>
    %11 = arith.mulf %10, %9 : vector<128x2xf32>
    %12 = arith.maximumf %9, %11 : vector<128x2xf32>
    %cst_11 = arith.constant dense<0.000000e+00> : vector<128x2xf32>
    %13 = tpu.matmul %12, %4, %cst_11 {dimension_numbers = #tpu.dot_dimension_numbers<[1], [0], [0], [1], [0, 0, 1, 1], [], []>} : vector<128x2xf32>, vector<2x2xf32>, vector<128x2xf32> -> vector<128x2xf32>
    %14 = arith.addf %8, %13 : vector<128x2xf32>
    %c0_12 = arith.constant 0 : index
    %c0_13 = arith.constant 0 : index
    %15 = vector.load %arg5[%c0_12, %c0_13] : memref<2x2xf32, #tpu.memory_space<vmem>>, vector<2x2xf32>
    %c0_14 = arith.constant 0 : index
    %c0_15 = arith.constant 0 : index
    %16 = vector.load %arg6[%c0_14, %c0_15] : memref<2x2xf32, #tpu.memory_space<vmem>>, vector<2x2xf32>
    %c0_16 = arith.constant 0 : index
    %c0_17 = arith.constant 0 : index
    %17 = vector.load %arg7[%c0_16, %c0_17] : memref<2x2xf32, #tpu.memory_space<vmem>>, vector<2x2xf32>
    %cst_18 = arith.constant 1.000000e-01 : f32
    %18 = vector.broadcast %cst_18 : f32 to vector<128x2xf32>
    %19 = arith.mulf %18, %14 : vector<128x2xf32>
    %20 = arith.maximumf %14, %19 : vector<128x2xf32>
    %cst_19 = arith.constant dense<0.000000e+00> : vector<128x2xf32>
    %21 = tpu.matmul %14, %15, %cst_19 {dimension_numbers = #tpu.dot_dimension_numbers<[1], [0], [0], [1], [0, 0, 1, 1], [], []>} : vector<128x2xf32>, vector<2x2xf32>, vector<128x2xf32> -> vector<128x2xf32>
    %cst_20 = arith.constant dense<0.000000e+00> : vector<128x2xf32>
    %22 = tpu.matmul %20, %16, %cst_20 {dimension_numbers = #tpu.dot_dimension_numbers<[1], [0], [0], [1], [0, 0, 1, 1], [], []>} : vector<128x2xf32>, vector<2x2xf32>, vector<128x2xf32> -> vector<128x2xf32>
    %cst_21 = arith.constant 1.000000e-01 : f32
    %23 = vector.broadcast %cst_21 : f32 to vector<128x2xf32>
    %24 = arith.mulf %23, %22 : vector<128x2xf32>
    %25 = arith.maximumf %22, %24 : vector<128x2xf32>
    %cst_22 = arith.constant dense<0.000000e+00> : vector<128x2xf32>
    %26 = tpu.matmul %25, %17, %cst_22 {dimension_numbers = #tpu.dot_dimension_numbers<[1], [0], [0], [1], [0, 0, 1, 1], [], []>} : vector<128x2xf32>, vector<2x2xf32>, vector<128x2xf32> -> vector<128x2xf32>
    %27 = arith.addf %21, %26 : vector<128x2xf32>
    %cst_23 = arith.constant 1.000000e-01 : f32
    %28 = vector.broadcast %cst_23 : f32 to vector<128x2xf32>
    %29 = arith.mulf %28, %27 : vector<128x2xf32>
    %30 = arith.maximumf %27, %29 : vector<128x2xf32>
    %c0_24 = arith.constant 0 : index
    %c0_25 = arith.constant 0 : index
    %31 = vector.load %arg8[%c0_24, %c0_25] : memref<2x8xf32, #tpu.memory_space<vmem>>, vector<2x8xf32>
    %c0_26 = arith.constant 0 : index
    %c0_27 = arith.constant 0 : index
    %32 = vector.load %arg9[%c0_26, %c0_27] : memref<2x8xf32, #tpu.memory_space<vmem>>, vector<2x8xf32>
    %cst_28 = arith.constant dense<0.000000e+00> : vector<128x8xf32>
    %33 = tpu.matmul %30, %31, %cst_28 {dimension_numbers = #tpu.dot_dimension_numbers<[1], [0], [0], [1], [0, 0, 1, 1], [], []>} : vector<128x2xf32>, vector<2x8xf32>, vector<128x8xf32> -> vector<128x8xf32>
    %cst_29 = arith.constant dense<0.000000e+00> : vector<128x8xf32>
    %34 = tpu.matmul %30, %32, %cst_29 {dimension_numbers = #tpu.dot_dimension_numbers<[1], [0], [0], [1], [0, 0, 1, 1], [], []>} : vector<128x2xf32>, vector<2x8xf32>, vector<128x8xf32> -> vector<128x8xf32>
    %35 = vector.shape_cast %33 : vector<128x8xf32> to vector<8x16x8xf32>
    %36 = vector.shape_cast %34 : vector<128x8xf32> to vector<8x16x8xf32>
    %37 = vector.extract_strided_slice %35 {offsets = [0, 0, 0], sizes = [8, 8, 8], strides = [1, 1, 1]} : vector<8x16x8xf32> to vector<8x8x8xf32>
    %38 = vector.extract_strided_slice %36 {offsets = [0, 8, 0], sizes = [8, 8, 8], strides = [1, 1, 1]} : vector<8x16x8xf32> to vector<8x8x8xf32>
    %39 = arith.addf %37, %38 : vector<8x8x8xf32>
    %c0_30 = arith.constant 0 : index
    %c0_31 = arith.constant 0 : index
    %c0_32 = arith.constant 0 : index
    %c0_33 = arith.constant 0 : index
    %40 = vector.load %arg10[%c0_30, %c0_31, %c0_32, %c0_33] : memref<1x8x8x8xf32, #tpu.memory_space<vmem>>, vector<1x8x8x8xf32>
    %41 = vector.shape_cast %40 : vector<1x8x8x8xf32> to vector<8x8x8xf32>
    %42 = vector.shape_cast %39 : vector<8x8x8xf32> to vector<1x8x8x8xf32>
    tpu.vector_store %arg10[%c0_30, %c0_31, %c0_32, %c0_33], %42 {strides = array<i32>} : memref<1x8x8x8xf32, #tpu.memory_space<vmem>>, vector<1x8x8x8xf32>,
    return
  }
  func.func @transform_0(%arg0: i32) -> (i32, i32, i32) {
    %c0_i32 = arith.constant 0 : i32
    %c0_i32_0 = arith.constant 0 : i32
    %c0_i32_1 = arith.constant 0 : i32
    return %arg0, %c0_i32, %c0_i32_0 : i32, i32, i32
  }
  func.func @transform_1(%arg0: i32) -> (i32, i32) {
    %c0_i32 = arith.constant 0 : i32
    %c0_i32_0 = arith.constant 0 : i32
    %c0_i32_1 = arith.constant 0 : i32
    return %c0_i32, %c0_i32_0 : i32, i32
  }
  func.func @transform_2(%arg0: i32) -> (i32, i32) {
    %c0_i32 = arith.constant 0 : i32
    %c0_i32_0 = arith.constant 0 : i32
    %c0_i32_1 = arith.constant 0 : i32
    return %c0_i32, %c0_i32_0 : i32, i32
  }
  func.func @transform_3(%arg0: i32) -> (i32, i32) {
    %c0_i32 = arith.constant 0 : i32
    %c0_i32_0 = arith.constant 0 : i32
    %c0_i32_1 = arith.constant 0 : i32
    return %c0_i32, %c0_i32_0 : i32, i32
  }
  func.func @transform_4(%arg0: i32) -> (i32, i32) {
    %c0_i32 = arith.constant 0 : i32
    %c0_i32_0 = arith.constant 0 : i32
    %c0_i32_1 = arith.constant 0 : i32
    return %c0_i32, %c0_i32_0 : i32, i32
  }
  func.func @transform_5(%arg0: i32) -> (i32, i32) {
    %c0_i32 = arith.constant 0 : i32
    %c0_i32_0 = arith.constant 0 : i32
    %c0_i32_1 = arith.constant 0 : i32
    return %c0_i32, %c0_i32_0 : i32, i32
  }
  func.func @transform_6(%arg0: i32) -> (i32, i32) {
    %c0_i32 = arith.constant 0 : i32
    %c0_i32_0 = arith.constant 0 : i32
    %c0_i32_1 = arith.constant 0 : i32
    return %c0_i32, %c0_i32_0 : i32, i32
  }
  func.func @transform_7(%arg0: i32) -> (i32, i32) {
    %c0_i32 = arith.constant 0 : i32
    %c0_i32_0 = arith.constant 0 : i32
    %c0_i32_1 = arith.constant 0 : i32
    return %c0_i32, %c0_i32_0 : i32, i32
  }
  func.func @transform_8(%arg0: i32) -> (i32, i32) {
    %c0_i32 = arith.constant 0 : i32
    %c0_i32_0 = arith.constant 0 : i32
    %c0_i32_1 = arith.constant 0 : i32
    return %c0_i32, %c0_i32_0 : i32, i32
  }
  func.func @transform_9(%arg0: i32) -> (i32, i32, i32, i32) {
    %c0_i32 = arith.constant 0 : i32
    %c0_i32_0 = arith.constant 0 : i32
    %c0_i32_1 = arith.constant 0 : i32
    %c0_i32_2 = arith.constant 0 : i32
    return %arg0, %c0_i32, %c0_i32_0, %c0_i32_1 : i32, i32, i32, i32
  }
}

module attributes {stable_mosaic.version = 11 : i64} {
  func.func @_encoder_layer_kernel(%arg0: i32, %arg1: memref<1x32x16xf32, #tpu.memory_space<vmem>>, %arg2: memref<16x16xf32, #tpu.memory_space<vmem>>, %arg3: memref<16x16xf32, #tpu.memory_space<vmem>>, %arg4: memref<16x16xf32, #tpu.memory_space<vmem>>, %arg5: memref<16x16xf32, #tpu.memory_space<vmem>>, %arg6: memref<16x16xf32, #tpu.memory_space<vmem>>, %arg7: memref<16x16xf32, #tpu.memory_space<vmem>>, %arg8: memref<16x16xf32, #tpu.memory_space<vmem>>, %arg9: memref<16x16xf32, #tpu.memory_space<vmem>>, %arg10: memref<1x4x4x16xf32, #tpu.memory_space<vmem>>) attributes {dimension_semantics = [#tpu.dimension_semantics<parallel>], iteration_bounds = array<i64: 2>, scalar_prefetch = 0 : i64, scratch_operands = 0 : i64, tpu.core_type = #tpu.core_type<tc>, window_params = [{transform_indices = @transform_0, window_bounds = array<i64: 1, 32, 16>}, {pipeline_mode = #tpu.pipeline_mode<synchronous>, transform_indices = @transform_1, window_bounds = array<i64: 16, 16>}, {pipeline_mode = #tpu.pipeline_mode<synchronous>, transform_indices = @transform_2, window_bounds = array<i64: 16, 16>}, {pipeline_mode = #tpu.pipeline_mode<synchronous>, transform_indices = @transform_3, window_bounds = array<i64: 16, 16>}, {pipeline_mode = #tpu.pipeline_mode<synchronous>, transform_indices = @transform_4, window_bounds = array<i64: 16, 16>}, {pipeline_mode = #tpu.pipeline_mode<synchronous>, transform_indices = @transform_5, window_bounds = array<i64: 16, 16>}, {pipeline_mode = #tpu.pipeline_mode<synchronous>, transform_indices = @transform_6, window_bounds = array<i64: 16, 16>}, {pipeline_mode = #tpu.pipeline_mode<synchronous>, transform_indices = @transform_7, window_bounds = array<i64: 16, 16>}, {pipeline_mode = #tpu.pipeline_mode<synchronous>, transform_indices = @transform_8, window_bounds = array<i64: 16, 16>}, {transform_indices = @transform_9, window_bounds = array<i64: 1, 4, 4, 16>}]} {
    %c0 = arith.constant 0 : index
    %c0_0 = arith.constant 0 : index
    %c0_1 = arith.constant 0 : index
    %0 = vector.load %arg1[%c0, %c0_0, %c0_1] : memref<1x32x16xf32, #tpu.memory_space<vmem>>, vector<1x32x16xf32>
    %1 = vector.shape_cast %0 : vector<1x32x16xf32> to vector<32x16xf32>
    %c0_2 = arith.constant 0 : index
    %c0_3 = arith.constant 0 : index
    %2 = vector.load %arg2[%c0_2, %c0_3] : memref<16x16xf32, #tpu.memory_space<vmem>>, vector<16x16xf32>
    %c0_4 = arith.constant 0 : index
    %c0_5 = arith.constant 0 : index
    %3 = vector.load %arg3[%c0_4, %c0_5] : memref<16x16xf32, #tpu.memory_space<vmem>>, vector<16x16xf32>
    %c0_6 = arith.constant 0 : index
    %c0_7 = arith.constant 0 : index
    %4 = vector.load %arg4[%c0_6, %c0_7] : memref<16x16xf32, #tpu.memory_space<vmem>>, vector<16x16xf32>
    %cst = arith.constant 1.000000e-01 : f32
    %5 = vector.broadcast %cst : f32 to vector<32x16xf32>
    %6 = arith.mulf %5, %1 : vector<32x16xf32>
    %7 = arith.maximumf %1, %6 : vector<32x16xf32>
    %cst_8 = arith.constant dense<0.000000e+00> : vector<32x16xf32>
    %8 = tpu.matmul %1, %2, %cst_8 {dimension_numbers = #tpu.dot_dimension_numbers<[1], [0], [0], [1], [0, 0, 1, 1], [], []>} : vector<32x16xf32>, vector<16x16xf32>, vector<32x16xf32> -> vector<32x16xf32>
    %cst_9 = arith.constant dense<0.000000e+00> : vector<32x16xf32>
    %9 = tpu.matmul %7, %3, %cst_9 {dimension_numbers = #tpu.dot_dimension_numbers<[1], [0], [0], [1], [0, 0, 1, 1], [], []>} : vector<32x16xf32>, vector<16x16xf32>, vector<32x16xf32> -> vector<32x16xf32>
    %cst_10 = arith.constant 1.000000e-01 : f32
    %10 = vector.broadcast %cst_10 : f32 to vector<32x16xf32>
    %11 = arith.mulf %10, %9 : vector<32x16xf32>
    %12 = arith.maximumf %9, %11 : vector<32x16xf32>
    %cst_11 = arith.constant dense<0.000000e+00> : vector<32x16xf32>
    %13 = tpu.matmul %12, %4, %cst_11 {dimension_numbers = #tpu.dot_dimension_numbers<[1], [0], [0], [1], [0, 0, 1, 1], [], []>} : vector<32x16xf32>, vector<16x16xf32>, vector<32x16xf32> -> vector<32x16xf32>
    %14 = arith.addf %8, %13 : vector<32x16xf32>
    %c0_12 = arith.constant 0 : index
    %c0_13 = arith.constant 0 : index
    %15 = vector.load %arg5[%c0_12, %c0_13] : memref<16x16xf32, #tpu.memory_space<vmem>>, vector<16x16xf32>
    %c0_14 = arith.constant 0 : index
    %c0_15 = arith.constant 0 : index
    %16 = vector.load %arg6[%c0_14, %c0_15] : memref<16x16xf32, #tpu.memory_space<vmem>>, vector<16x16xf32>
    %c0_16 = arith.constant 0 : index
    %c0_17 = arith.constant 0 : index
    %17 = vector.load %arg7[%c0_16, %c0_17] : memref<16x16xf32, #tpu.memory_space<vmem>>, vector<16x16xf32>
    %cst_18 = arith.constant 1.000000e-01 : f32
    %18 = vector.broadcast %cst_18 : f32 to vector<32x16xf32>
    %19 = arith.mulf %18, %14 : vector<32x16xf32>
    %20 = arith.maximumf %14, %19 : vector<32x16xf32>
    %cst_19 = arith.constant dense<0.000000e+00> : vector<32x16xf32>
    %21 = tpu.matmul %14, %15, %cst_19 {dimension_numbers = #tpu.dot_dimension_numbers<[1], [0], [0], [1], [0, 0, 1, 1], [], []>} : vector<32x16xf32>, vector<16x16xf32>, vector<32x16xf32> -> vector<32x16xf32>
    %cst_20 = arith.constant dense<0.000000e+00> : vector<32x16xf32>
    %22 = tpu.matmul %20, %16, %cst_20 {dimension_numbers = #tpu.dot_dimension_numbers<[1], [0], [0], [1], [0, 0, 1, 1], [], []>} : vector<32x16xf32>, vector<16x16xf32>, vector<32x16xf32> -> vector<32x16xf32>
    %cst_21 = arith.constant 1.000000e-01 : f32
    %23 = vector.broadcast %cst_21 : f32 to vector<32x16xf32>
    %24 = arith.mulf %23, %22 : vector<32x16xf32>
    %25 = arith.maximumf %22, %24 : vector<32x16xf32>
    %cst_22 = arith.constant dense<0.000000e+00> : vector<32x16xf32>
    %26 = tpu.matmul %25, %17, %cst_22 {dimension_numbers = #tpu.dot_dimension_numbers<[1], [0], [0], [1], [0, 0, 1, 1], [], []>} : vector<32x16xf32>, vector<16x16xf32>, vector<32x16xf32> -> vector<32x16xf32>
    %27 = arith.addf %21, %26 : vector<32x16xf32>
    %cst_23 = arith.constant 1.000000e-01 : f32
    %28 = vector.broadcast %cst_23 : f32 to vector<32x16xf32>
    %29 = arith.mulf %28, %27 : vector<32x16xf32>
    %30 = arith.maximumf %27, %29 : vector<32x16xf32>
    %c0_24 = arith.constant 0 : index
    %c0_25 = arith.constant 0 : index
    %31 = vector.load %arg8[%c0_24, %c0_25] : memref<16x16xf32, #tpu.memory_space<vmem>>, vector<16x16xf32>
    %c0_26 = arith.constant 0 : index
    %c0_27 = arith.constant 0 : index
    %32 = vector.load %arg9[%c0_26, %c0_27] : memref<16x16xf32, #tpu.memory_space<vmem>>, vector<16x16xf32>
    %cst_28 = arith.constant dense<0.000000e+00> : vector<32x16xf32>
    %33 = tpu.matmul %30, %31, %cst_28 {dimension_numbers = #tpu.dot_dimension_numbers<[1], [0], [0], [1], [0, 0, 1, 1], [], []>} : vector<32x16xf32>, vector<16x16xf32>, vector<32x16xf32> -> vector<32x16xf32>
    %cst_29 = arith.constant dense<0.000000e+00> : vector<32x16xf32>
    %34 = tpu.matmul %30, %32, %cst_29 {dimension_numbers = #tpu.dot_dimension_numbers<[1], [0], [0], [1], [0, 0, 1, 1], [], []>} : vector<32x16xf32>, vector<16x16xf32>, vector<32x16xf32> -> vector<32x16xf32>
    %35 = vector.shape_cast %33 : vector<32x16xf32> to vector<4x8x16xf32>
    %36 = vector.shape_cast %34 : vector<32x16xf32> to vector<4x8x16xf32>
    %37 = vector.extract_strided_slice %35 {offsets = [0, 0, 0], sizes = [4, 4, 16], strides = [1, 1, 1]} : vector<4x8x16xf32> to vector<4x4x16xf32>
    %38 = vector.extract_strided_slice %36 {offsets = [0, 4, 0], sizes = [4, 4, 16], strides = [1, 1, 1]} : vector<4x8x16xf32> to vector<4x4x16xf32>
    %39 = arith.addf %37, %38 : vector<4x4x16xf32>
    %c0_30 = arith.constant 0 : index
    %c0_31 = arith.constant 0 : index
    %c0_32 = arith.constant 0 : index
    %c0_33 = arith.constant 0 : index
    %40 = vector.load %arg10[%c0_30, %c0_31, %c0_32, %c0_33] : memref<1x4x4x16xf32, #tpu.memory_space<vmem>>, vector<1x4x4x16xf32>
    %41 = vector.shape_cast %40 : vector<1x4x4x16xf32> to vector<4x4x16xf32>
    %42 = vector.shape_cast %39 : vector<4x4x16xf32> to vector<1x4x4x16xf32>
    tpu.vector_store %arg10[%c0_30, %c0_31, %c0_32, %c0_33], %42 {strides = array<i32>} : memref<1x4x4x16xf32, #tpu.memory_space<vmem>>, vector<1x4x4x16xf32>,
    return
  }
  func.func @transform_0(%arg0: i32) -> (i32, i32, i32) {
    %c0_i32 = arith.constant 0 : i32
    %c0_i32_0 = arith.constant 0 : i32
    %c0_i32_1 = arith.constant 0 : i32
    return %arg0, %c0_i32, %c0_i32_0 : i32, i32, i32
  }
  func.func @transform_1(%arg0: i32) -> (i32, i32) {
    %c0_i32 = arith.constant 0 : i32
    %c0_i32_0 = arith.constant 0 : i32
    %c0_i32_1 = arith.constant 0 : i32
    return %c0_i32, %c0_i32_0 : i32, i32
  }
  func.func @transform_2(%arg0: i32) -> (i32, i32) {
    %c0_i32 = arith.constant 0 : i32
    %c0_i32_0 = arith.constant 0 : i32
    %c0_i32_1 = arith.constant 0 : i32
    return %c0_i32, %c0_i32_0 : i32, i32
  }
  func.func @transform_3(%arg0: i32) -> (i32, i32) {
    %c0_i32 = arith.constant 0 : i32
    %c0_i32_0 = arith.constant 0 : i32
    %c0_i32_1 = arith.constant 0 : i32
    return %c0_i32, %c0_i32_0 : i32, i32
  }
  func.func @transform_4(%arg0: i32) -> (i32, i32) {
    %c0_i32 = arith.constant 0 : i32
    %c0_i32_0 = arith.constant 0 : i32
    %c0_i32_1 = arith.constant 0 : i32
    return %c0_i32, %c0_i32_0 : i32, i32
  }
  func.func @transform_5(%arg0: i32) -> (i32, i32) {
    %c0_i32 = arith.constant 0 : i32
    %c0_i32_0 = arith.constant 0 : i32
    %c0_i32_1 = arith.constant 0 : i32
    return %c0_i32, %c0_i32_0 : i32, i32
  }
  func.func @transform_6(%arg0: i32) -> (i32, i32) {
    %c0_i32 = arith.constant 0 : i32
    %c0_i32_0 = arith.constant 0 : i32
    %c0_i32_1 = arith.constant 0 : i32
    return %c0_i32, %c0_i32_0 : i32, i32
  }
  func.func @transform_7(%arg0: i32) -> (i32, i32) {
    %c0_i32 = arith.constant 0 : i32
    %c0_i32_0 = arith.constant 0 : i32
    %c0_i32_1 = arith.constant 0 : i32
    return %c0_i32, %c0_i32_0 : i32, i32
  }
  func.func @transform_8(%arg0: i32) -> (i32, i32) {
    %c0_i32 = arith.constant 0 : i32
    %c0_i32_0 = arith.constant 0 : i32
    %c0_i32_1 = arith.constant 0 : i32
    return %c0_i32, %c0_i32_0 : i32, i32
  }
  func.func @transform_9(%arg0: i32) -> (i32, i32, i32, i32) {
    %c0_i32 = arith.constant 0 : i32
    %c0_i32_0 = arith.constant 0 : i32
    %c0_i32_1 = arith.constant 0 : i32
    %c0_i32_2 = arith.constant 0 : i32
    return %arg0, %c0_i32, %c0_i32_0, %c0_i32_1 : i32, i32, i32, i32
  }
}

</mosaic_0001>

<bundles_post_ra>
// kernel: encoder_forward.3
= control target key start
LH: loop header
LB: loop body
LE: loop exit
PB: predicated region body
PF: predicated region fallthrough
CT: control target
= control target key end

     0   :  { %14 = vsyncpa [#allocation3], 0  ;;  %s1812_s0 = inlined_call_operand.vmem [shape: f32[2,32,16], index: 0, kind: input, shape index: {}]   ;;  %s1813_s1 = inlined_call_operand.vmem [shape: f32[16,16], index: 1, kind: input, shape index: {}]   ;;  %s1814_s2 = inlined_call_operand.vmem [shape: f32[16,16], index: 2, kind: input, shape index: {}]   ;;  %s1815_s3 = inlined_call_operand.vmem [shape: f32[16,16], index: 3, kind: input, shape index: {}]   ;;  %s1816_s4 = inlined_call_operand.vmem [shape: f32[16,16], index: 4, kind: input, shape index: {}]   ;;  %s1817_s5 = inlined_call_operand.vmem [shape: f32[16,16], index: 5, kind: input, shape index: {}]   ;;  %s1818_s6 = inlined_call_operand.vmem [shape: f32[16,16], index: 6, kind: input, shape index: {}]   ;;  %s1819_s7 = inlined_call_operand.vmem [shape: f32[16,16], index: 7, kind: input, shape index: {}]   ;;  %s1820_s8 = inlined_call_operand.vmem [shape: f32[16,16], index: 8, kind: input, shape index: {}]   ;;  %s1821_s9 = inlined_call_operand.hbm [shape: f32[2,4,4,16], index: 9, kind: output, shape index: {}]  }
   0x1   :  { %16 = vsyncpa [#allocation3 + $0x1], 0  ;;  %s1625_s30 = smov 0   ;;  %s1627_s10 = smov 0  }
   0x2   :  { %s1629_s11 = smov 0   ;;  %s1631_s12 = smov 0  }
   0x3 LB: > { %s1646_s13 = sadd.s32 4294967295, %s1570_s12   ;;  %s1253_s14 = sadd.s32 4294967294, %s1570_s12   ;;  %s1570_s12 = sphi %s1631_s12, %s1827_s12   ;;  %s1566_s11 = sphi %s1629_s11, %s1826_s11   ;;  %s1562_s10 = sphi %s1627_s10, %s1825_s10   ;;  %s1558_s30 = sphi %s1625_s30, %s1824_s30  }
   0x4   : > { %s1650_s15 = sadd.s32 1, %s1570_s12   ;;  %s223_s16 = sadd.s32 1, %s1566_s11 }
   0x5   : > { %s220_s17 = ssub.s32 %s1570_s12, %s1650_s15  ;;  %p233_p0 = scmp.ne.s32.totalorder %s1566_s11, %s1562_s10 }
   0x6   : > { %p221_p1 = scmp.eq.s32.totalorder %s220_s17, 0  ;;  %p234_p2 = scmp.eq.s32.totalorder %s1646_s13, 1 }
   0x7   : > { %p239_p3 = scmp.ne.s32.totalorder %s1562_s10, %s1558_s30  ;;  %p240_p4 = scmp.eq.s32.totalorder %s1253_s14, 1 }
   0x8   : > { %s1661_s18 = scalar_select %p221_p1, %s1566_s11, %s223_s16  }
   0x9   : > { %p1663_p5 = por %p234_p2, %p233_p0  ;;  %p1667_p6 = por %p240_p4, %p239_p3 }
   0xa   : > { %p1256_p7 = scmp.ge.s32.totalorder %s1570_s12, 1  ;;  %p290_p8 = scmp.lt.s32.totalorder %s1570_s12, 3 }
   0xc   : > { %p291_p9 = pnand %p1256_p7, %p290_p8 }
   0xd   : > { %v337_v0 = vld [vmem:[%s1814_s2] sm:$0xff] (!%p291_p9)  ;;  %v338_v1 = vld [vmem:[%s1814_s2 + $0x8] sm:$0xff] (!%p291_p9)  ;;  %p326_p10 = scmp.lt.s32.totalorder (!%p291_p9), %s1646_s13, 1  ;;  %vm349_vm0 = vcmask (!%p291_p9), 130048   ;;  %s323_s22 = sand.u32 (!%p291_p9), 1, %s1562_s10   ;;  %vm1172_vm1 = vcmask (!%p291_p9), 125952  }
   0xe   : > { %294 = sbr.rel (%p291_p9) target bundleno = 1163 (0x48b), region = 56  ;;  %v1427_v2 = vpack.c.bf16 (!%p291_p9), %v338_v1, %v337_v0  ;;  %v339_v15 = vld [vmem:[%s1815_s3] sm:$0xff] (!%p291_p9)  ;;  %v340_v16 = vld [vmem:[%s1815_s3 + $0x8] sm:$0xff] (!%p291_p9)  ;;  %s1257_s23 = sshll.u32 (!%p291_p9), %s323_s22, 4 }
   0xf   : > { %v1431_v17 = vpack.c.bf16 (!%p291_p9), %v340_v16, %v339_v15  ;;  %v335_v18 = vld [vmem:[%s1813_s1] sm:$0xff] (!%p291_p9)  ;;  %v336_v19 = vld [vmem:[%s1813_s1 + $0x8] sm:$0xff] (!%p291_p9)  ;;  %s325_s24 = scalar_lea.vmem (!%p291_p9), [#allocation2], %s1257_s23  ;;  %s1572_s16 = smov (!%p291_p9), [#allocation2]  }
  0x10   : > { %1428 = vmatprep.subr.bf16.mxu0 (!%p291_p9), %v1427_v2  ;;  %v1435_v20 = vpack.c.bf16 (!%p291_p9), %v336_v19, %v335_v18  ;;  %v651_v21 = vld [vmem:[%s1817_s5] sm:$0xff] (!%p291_p9)  ;;  %v652_v22 = vld [vmem:[%s1817_s5 + $0x8] sm:$0xff] (!%p291_p9)  ;;  %s1512_s17 = sshll.u32 (!%p291_p9), %s1572_s16, 4  ;;  %s1513_s17 = int_to_ptr.vmem [resolvable:$false] %s1512_s17 }
  0x11   : > { %1430 = vmatpush3.bf16.msra.mxu0 (!%p291_p9), %v1427_v2  ;;  %1432 = vmatprep.subr.bf16.mxu1 (!%p291_p9), %v1431_v17  ;;  %v1439_v23 = vpack.c.bf16 (!%p291_p9), %v652_v22, %v651_v21  ;;  %v653_v36 = vld [vmem:[%s1818_s6] sm:$0xff] (!%p291_p9)  ;;  %v654_v37 = vld [vmem:[%s1818_s6 + $0x8] sm:$0xff] (!%p291_p9)  ;;  %s1514_s21 = scalar_lea.vmem (!%p291_p9), %s1513_s17, 512 }
  0x12   : > { %1434 = vmatpush3.bf16.msra.mxu1 (!%p291_p9), %v1431_v17  ;;  %v1443_v38 = vpack.c.bf16 (!%p291_p9), %v654_v37, %v653_v36  ;;  %v649_v51 = vld [vmem:[%s1816_s4] sm:$0xff] (!%p291_p9)  ;;  %v650_v52 = vld [vmem:[%s1816_s4 + $0x8] sm:$0xff] (!%p291_p9) }
  0x13   : > { %1436 = vmatprep.subr.bf16.mxu1 (!%p291_p9), %v1435_v20  ;;  %1440 = vmatprep.subr.bf16.mxu0 (!%p291_p9), %v1439_v23  ;;  %v1447_v53 = vpack.c.bf16 (!%p291_p9), %v650_v52, %v649_v51  ;;  %v970_v54 = vld [vmem:[%s1819_s7] sm:$0xff] (!%p291_p9)  ;;  %v971_v55 = vld [vmem:[%s1819_s7 + $0x8] sm:$0xff] (!%p291_p9) }
  0x14   : > { %v1451_v56 = vpack.c.bf16 (!%p291_p9), %v971_v55, %v970_v54 }
  0x15   : > { %s327_s25 = scalar_select %p326_p10, %s1646_s13, 1 }
  0x17   : > { %s1297_s26 = sshll.u32 %s327_s25, 5  ;;  %s1191_s25 = sshll.u32 %s325_s24, 4  ;;  %s1767_s25 = int_to_ptr.vmem [resolvable:$true] %s1191_s25 }
  0x18   : > { %s330_s29 = scalar_lea.vmem %s1812_s0, %s1297_s26  ;;  %s1298_s26 = sshll.u32 %s1646_s13, 8 }
  0x19   : > { %v331_v3 = vld [vmem:[%s330_s29] sm:$0xff]  ;;  %v332_v4 = vld [vmem:[%s330_s29 + $0x8] sm:$0xff]  ;;  %v333_v5 = vld [vmem:[%s330_s29 + $0x10] sm:$0xff]  ;;  %s1771_s13 = scalar_lea.sflag [#allocation3], %s323_s22  ;;  %s1508_s14 = scalar_lea.vmem %s1767_s25, 256 }
  0x1a   : > { %v341_v6 = vmul.f32 0.1, %v331_v3  ;;  %v342_v7 = vmul.f32 0.1, %v332_v4  ;;  %v343_v8 = vmul.f32 0.1, %v333_v5  ;;  %p1509_p11 = scmp.ne.s32.totalorder %s1767_s25, %s1508_s14  ;;  %p1515_p0 = scmp.lt.s32.totalorder %s1767_s25, %s1513_s17 }
  0x1b   : > { %v334_v9 = vld [vmem:[%s330_s29 + $0x18] sm:$0xff]  ;;  %s1765_s29 = scalar_lea.hbm %s1821_s9, %s1298_s26  ;;  %p1516_p1 = scmp.lt.s32.totalorder %s1514_s21, %s1508_s14 }
  0x1c   : > { %v345_v10 = vmax.f32 %v331_v3, %v341_v6  ;;  %v346_v11 = vmax.f32 %v332_v4, %v342_v7  ;;  %v347_v12 = vmax.f32 %v333_v5, %v343_v8  ;;  %v344_v13 = vmul.f32 0.1, %v334_v9  ;;  %v973_v6 = vld [vmem:[%s1820_s8 + $0x8] sm:$0xff]  ;;  %p1510_p12 = pnand %p1509_p11, %p1663_p5 }
  0x1d   : > { %p1517_p2 = por %p1516_p1, %p1515_p0 }
  0x1e   : > { %1351 = vmatprep.mubr.msk.f32.mxu0 %vm349_vm0, %v345_v10  ;;  %v348_v14 = vmax.f32 %v334_v9, %v344_v13  ;;  %p1511_p13 = pneg %p1510_p12 }
  0x1f   : > { %1352 = vmatmul.mubr.msk.f32.vlgmr.msra.gmra.mrb[0].mxu0 %vm349_vm0, %v346_v11 }
  0x20   : > { %1354 = vmatprep.mubr.msk.f32.mxu0 %vm349_vm0, %v347_v12  ;;  %1442 = vmatpush3.bf16.msra.mxu0 %v1439_v23  ;;  %p1518_p3 = pnand %p1517_p2, %p1511_p13 }
  0x21   : > { %1444 = vmatprep.subr.bf16.mxu0 %v1443_v38 }
  0x23   : > { %1355 = vmatmul.mubr.msk.f32.gmra.mrb[2].mxu0 %vm349_vm0, %v348_v14 }
  0xf2   : > { %v1353_v24 = vpop.f32.mrb[0].mxu0 }
  0xf3   : > { %v448_v25 = vmul.f32 0.1, %v1353_v24  ;;  %v428_v26 = vpop.f32.mrb[1].mxu0 }
  0xf4   : > { %v447_v27 = vmul.f32 0.1, %v428_v26 }
  0xf5   : > { %v452_v30 = vmax.f32 %v1353_v24, %v448_v25 }
  0xf6   : > { %v1356_v28 = vpop.f32.mrb[2].mxu0  ;;  %v451_v29 = vmax.f32 %v428_v26, %v447_v27 }
  0xf7   : > { %v450_v31 = vmul.f32 0.1, %v1356_v28  ;;  %v438_v32 = vpop.f32.mrb[3].mxu0 }
  0xf8   : > { %v449_v33 = vmul.f32 0.1, %v438_v32  ;;  %1361 = vmatprep.mubr.msk.f32.mxu1 %vm349_vm0, %v451_v29 }
  0xf9   : > { %1362 = vmatmul.mubr.msk.f32.vlgmr.msra.gmra.mrb[0].mxu1 %vm349_vm0, %v452_v30  ;;  %v454_v35 = vmax.f32 %v1356_v28, %v450_v31 }
  0xfa   : > { %v453_v34 = vmax.f32 %v438_v32, %v449_v33  ;;  %1438 = vmatpush3.bf16.msra.mxu1 %v1435_v20 }
  0xfb   : > { %1452 = vmatprep.subr.bf16.mxu1 %v1451_v56 }
  0xfc   : > { %1364 = vmatprep.mubr.msk.f32.mxu1 %vm349_vm0, %v453_v34 }
  0xfd   : > { %1365 = vmatmul.mubr.msk.f32.gmra.mrb[2].mxu1 %vm349_vm0, %v454_v35 }
  0xfe   : > { %1371 = vmatprep.mubr.msk.f32.mxu1 %vm349_vm0, %v331_v3 }
 0x101   : > { %1372 = vmatmul.mubr.msk.f32.vlgmr.msra.gmra.mrb[0].mxu1 %vm349_vm0, %v332_v4 }
 0x102   : > { %1374 = vmatprep.mubr.msk.f32.mxu1 %vm349_vm0, %v333_v5  ;;  %1454 = vmatpush3.bf16.msra.mxu1 %v1451_v56  ;;  %v972_v5 = vld [vmem:[%s1820_s8] sm:$0xff] }
 0x103   : > { %v1455_v7 = vpack.c.bf16 %v973_v6, %v972_v5 }
 0x105   : > { %1375 = vmatmul.mubr.msk.f32.gmra.mrb[2].mxu1 %vm349_vm0, %v334_v9  ;;  %1456 = vmatprep.subr.bf16.mxu1 %v1455_v7 }
 0x1d4   : > { %v1373_v39 = vpop.f32.mrb[0].mxu1 }
 0x1d5   : > { %v656_v40 = vmul.f32 0.1, %v1373_v39  ;;  %v630_v41 = vpop.f32.mrb[1].mxu1 }
 0x1d6   : > { %v655_v42 = vmul.f32 0.1, %v630_v41 }
 0x1d7   : > { %v660_v45 = vmax.f32 %v1373_v39, %v656_v40 }
 0x1d8   : > { %v659_v43 = vmax.f32 %v630_v41, %v655_v42  ;;  %v1376_v44 = vpop.f32.mrb[2].mxu1 }
 0x1d9   : > { %v658_v46 = vmul.f32 0.1, %v1376_v44  ;;  %v640_v47 = vpop.f32.mrb[3].mxu1 }
 0x1da   : > { %v657_v48 = vmul.f32 0.1, %v640_v47  ;;  %1381 = vmatprep.mubr.msk.f32.mxu0 %vm349_vm0, %v659_v43 }
 0x1db   : > { %1382 = vmatmul.mubr.msk.f32.vlgmr.msra.gmra.mrb[4].mxu0 %vm349_vm0, %v660_v45  ;;  %v662_v50 = vmax.f32 %v1376_v44, %v658_v46 }
 0x1dc   : > { %v661_v49 = vmax.f32 %v640_v47, %v657_v48  ;;  %1446 = vmatpush3.bf16.msra.mxu0 %v1443_v38 }
 0x1dd   : > { %1448 = vmatprep.subr.bf16.mxu0 %v1447_v53 }
 0x1de   : > { %1384 = vmatprep.mubr.msk.f32.mxu0 %vm349_vm0, %v661_v49 }
 0x1df   : > { %1385 = vmatmul.mubr.msk.f32.gmra.mrb[6].mxu0 %vm349_vm0, %v662_v50 }
 0x2ae   : > { %v1383_v57 = vpop.f32.mrb[4].mxu0 }
 0x2af   : > { %v761_v58 = vmul.f32 0.1, %v1383_v57  ;;  %v741_v59 = vpop.f32.mrb[5].mxu0 }
 0x2b0   : > { %v760_v60 = vmul.f32 0.1, %v741_v59 }
 0x2b1   : > { %v765_v63 = vmax.f32 %v1383_v57, %v761_v58 }
 0x2b2   : > { %v764_v61 = vmax.f32 %v741_v59, %v760_v60  ;;  %v1386_v62 = vpop.f32.mrb[6].mxu0 }
 0x2b3   : > { %v763_v0 = vmul.f32 0.1, %v1386_v62  ;;  %v751_v1 = vpop.f32.mrb[7].mxu0 }
 0x2b4   : > { %v762_v2 = vmul.f32 0.1, %v751_v1  ;;  %1391 = vmatprep.mubr.msk.f32.mxu0 %vm349_vm0, %v764_v61 }
 0x2b5   : > { %1392 = vmatmul.mubr.msk.f32.vlgmr.msra.gmra.mrb[8].mxu0 %vm349_vm0, %v765_v63  ;;  %v767_v4 = vmax.f32 %v1386_v62, %v763_v0 }
 0x2b6   : > { %v766_v3 = vmax.f32 %v751_v1, %v762_v2  ;;  %1450 = vmatpush3.bf16.msra.mxu0 %v1447_v53 }
 0x2b8   : > { %1394 = vmatprep.mubr.msk.f32.mxu0 %vm349_vm0, %v766_v3 }
 0x2b9   : > { %1395 = vmatmul.mubr.msk.f32.gmra.mrb[10].mxu0 %vm349_vm0, %v767_v4 }
 0x2ba   : > { %1401 = vmatprep.mubr.msk.f32.mxu0 %vm349_vm0, %v630_v41 }
 0x2bd   : > { %1402 = vmatmul.mubr.msk.f32.vlgmr.msra.gmra.mrb[8].mxu0 %vm349_vm0, %v1373_v39 }
 0x2be   : > { %1404 = vmatprep.mubr.msk.f32.mxu0 %vm349_vm0, %v640_v47 }
 0x2c1   : > { %1405 = vmatmul.mubr.msk.f32.gmra.mrb[10].mxu0 %vm349_vm0, %v1376_v44 }
 0x390   : > { %v1403_v8 = vpop.f32.mrb[8].mxu0 }
 0x391   : > { %v963_v9 = vmul.f32 0.1, %v1403_v8  ;;  %v943_v10 = vpop.f32.mrb[9].mxu0 }
 0x392   : > { %v962_v11 = vmul.f32 0.1, %v943_v10 }
 0x393   : > { %v967_v14 = vmax.f32 %v1403_v8, %v963_v9 }
 0x394   : > { %v966_v12 = vmax.f32 %v943_v10, %v962_v11  ;;  %v1406_v13 = vpop.f32.mrb[10].mxu0 }
 0x395   : > { %v965_v15 = vmul.f32 0.1, %v1406_v13  ;;  %v953_v16 = vpop.f32.mrb[11].mxu0 }
 0x396   : > { %v964_v17 = vmul.f32 0.1, %v953_v16  ;;  %1411 = vmatprep.mubr.msk.f32.mxu1 %vm349_vm0, %v966_v12 }
 0x397   : > { %1412 = vmatmul.mubr.msk.f32.vlgmr.msra.gmra.mrb[4].mxu1 %vm349_vm0, %v967_v14  ;;  %v969_v19 = vmax.f32 %v1406_v13, %v965_v15 }
 0x398   : > { %v968_v18 = vmax.f32 %v953_v16, %v964_v17  ;;  %1458 = vmatpush3.bf16.msra.mxu1 %v1455_v7 }
 0x39a   : > { %1414 = vmatprep.mubr.msk.f32.mxu1 %vm349_vm0, %v968_v18 }
 0x39b   : > { %1415 = vmatmul.mubr.msk.f32.gmra.mrb[6].mxu1 %vm349_vm0, %v969_v19 }
 0x39c   : > { %1421 = vmatprep.mubr.msk.f32.mxu1 %vm349_vm0, %v966_v12 }
 0x39f   : > { %1422 = vmatmul.mubr.msk.f32.vlgmr.msra.gmra.mrb[8].mxu1 %vm349_vm0, %v967_v14 }
 0x3a0   : > { %1424 = vmatprep.mubr.msk.f32.mxu1 %vm349_vm0, %v968_v18 }
 0x3a3   : > { %1425 = vmatmul.mubr.msk.f32.gmra.mrb[10].mxu1 %vm349_vm0, %v969_v19 }
 0x46a   : > { %v1413_v20 = vpop.f32.mrb[4].mxu1 }
 0x46b   : > { %v1052_v21 = vpop.f32.mrb[5].mxu1 }
 0x46e   : > { %v1416_v22 = vpop.f32.mrb[6].mxu1 }
 0x46f   : > { %v1062_v23 = vpop.f32.mrb[7].mxu1 }
 0x472   : > { %v1423_v24 = vpop.f32.mrb[8].mxu1 }
 0x473   : > { %v1161_v25 = vrot.slane %v1423_v24, 4  ;;  %v1137_v26 = vpop.f32.mrb[9].mxu1 }
 0x474   : > { %v1160_v27 = vrot.slane %v1137_v26, 4 }
 0x475   : > { %v1169_v28 = vadd.f32 %v1413_v20, %v1161_v25 }
 0x476   : > { %v1168_v29 = vadd.f32 %v1160_v27, %v1052_v21  ;;  %v1426_v30 = vpop.f32.mrb[10].mxu1 }
 0x477   : > { %1174 = vst.msk [vmem:[%s325_s24 + $0x4] sm:$0xf] %vm1172_vm1, %v1169_v28  ;;  %v1163_v31 = vrot.slane %v1426_v30, 4  ;;  %v1147_v32 = vpop.f32.mrb[11].mxu1 }
 0x478   : > { %1173 = vst.msk [vmem:[%s325_s24] sm:$0xf] %vm1172_vm1, %v1168_v29  ;;  %v1162_v33 = vrot.slane %v1147_v32, 4 }
 0x479   : > { %v1171_v34 = vadd.f32 %v1416_v22, %v1163_v31 }
 0x47a   : > { %v1170_v35 = vadd.f32 %v1162_v33, %v1062_v23 }
 0x47b   : > { %1176 = vst.msk [vmem:[%s325_s24 + $0xc] sm:$0xf] %vm1172_vm1, %v1171_v34 }
 0x47c   : > { %1175 = vst.msk [vmem:[%s325_s24 + $0x8] sm:$0xf] %vm1172_vm1, %v1170_v35 }
 0x47d   : > { %1521 = shalt.err (!%p1518_p3)
}
 0x47e   : > { %s1522_s22 = scalar_lea.hbm %s1765_s29, 256  ;;  %s1526_s26 = scalar_lea.hbm %s1821_s9, 512 }
 0x47f   : > { %p1523_p4 = scmp.ne.s32.totalorder %s1765_s29, %s1522_s22  ;;  %p1527_p9 = scmp.lt.u32.totalorder %s1765_s29, %s1821_s9 }
 0x480   : > { %p1528_p10 = scmp.lt.u32.totalorder %s1526_s26, %s1522_s22  ;;  %p1530_p12 = scmp.lt.u32.totalorder %s1522_s22, %s1765_s29 }
 0x481   : > { %p1524_p7 = pnand %p1523_p4, %p1663_p5 }
 0x482   : > { %p1529_p11 = por %p1528_p10, %p1527_p9 }
 0x483   : > { %p1525_p8 = pneg %p1524_p7 }
 0x484   : > { %p1531_p13 = por %p1530_p12, %p1529_p11 }
 0x486   : > { %p1532_p0 = pnand %p1531_p13, %p1525_p8 }
 0x488   : > { %1535 = shalt.err (!%p1532_p0)
}
 0x489   : > { %s1573_s14 = smov 64   ;;  %s1574_s16 = smov 4  }
 0x48a   : > { %1467 = dma.vmem_to_hbm [thread:$0]  (%p1663_p5), %s1767_s25, 256, %s1765_s29, %s1771_s13, %s1573_s14, %s1573_s14, %s1574_s16  }
 0x48b PF: > { %p1473_p1 = scmp.ge.s32.totalorder %s1570_s12, 2  ;;  %s1206_s17 = sand.u32 1, %s1558_s30  }
 0x48c   : > { %s1207_s21 = scalar_lea.sflag [#allocation3], %s1206_s17 }
 0x48d   : > { %p1470_p2 = pnand %p1473_p1, %p1667_p6 }
 0x48f   : > { %1553 = dma.done.wait (!%p1470_p2), %s1207_s21, 256  }
 0x490   : > { %1555 = vsyncadd (!%p1470_p2), %s1207_s21, 4294967040  ;;  %p19_p3 = scmp.ge.s32.totalorder %s1650_s15, 4   ;;  %s1824_s30 = smov %s1562_s10 }
 0x491   : > { %s1825_s10 = smov %s1566_s11  ;;  %s1826_s11 = smov %s1661_s18 }
 0x492   : > { %s1827_s12 = smov %s1650_s15  ;;  %21 = sbr.rel (!%p19_p3) target bundleno = 3 (0x3), region = 91 }
 0x499   :  { %1212 = vsyncpa [#allocation3], 1 }
 0x49a   :  { %1214 = vsyncpa [#allocation3 + $0x1], 1 }

// kernel: encoder_forward.2
= control target key start
LH: loop header
LB: loop body
LE: loop exit
PB: predicated region body
PF: predicated region fallthrough
CT: control target
= control target key end

     0   :  { %s2686_s30 = smov 0   ;;  %s3071_s0 = inlined_call_operand.vmem [shape: f32[2,128,2], index: 0, kind: input, shape index: {}]   ;;  %s3072_s1 = inlined_call_operand.vmem [shape: f32[2,2], index: 1, kind: input, shape index: {}]   ;;  %s3073_s2 = inlined_call_operand.vmem [shape: f32[2,2], index: 2, kind: input, shape index: {}]   ;;  %s3074_s3 = inlined_call_operand.vmem [shape: f32[2,2], index: 3, kind: input, shape index: {}]   ;;  %s3075_s4 = inlined_call_operand.vmem [shape: f32[2,2], index: 4, kind: input, shape index: {}]   ;;  %s3076_s5 = inlined_call_operand.vmem [shape: f32[2,2], index: 5, kind: input, shape index: {}]   ;;  %s3077_s6 = inlined_call_operand.vmem [shape: f32[2,2], index: 6, kind: input, shape index: {}]   ;;  %s3078_s7 = inlined_call_operand.vmem [shape: f32[2,8], index: 7, kind: input, shape index: {}]   ;;  %s3079_s8 = inlined_call_operand.vmem [shape: f32[2,8], index: 8, kind: input, shape index: {}]   ;;  %s3080_s9 = inlined_call_operand.vmem [shape: f32[2,8,8,8], index: 9, kind: output, shape index: {}]  }
   0x1 LB: > { %s2095_s10 = sadd.s32 4294967295, %s2634_s30   ;;  %p2099_p0 = scmp.ge.s32.totalorder %s2634_s30, 1  ;;  %s2634_s30 = sphi %s2686_s30, %s19_s30  }
   0x2   : > { %p287_p1 = scmp.lt.s32.totalorder %s2634_s30, 3 }
   0x4   : > { %p288_p2 = pnand %p2099_p0, %p287_p1 }
   0x5   : > { %v350_v0 = vld [vmem:[%s3073_s2] sm:$0x3] (!%p288_p2)  ;;  %vm433_vm0 = vcmask (!%p288_p2), 1041408   ;;  %p323_p3 = scmp.lt.s32.totalorder (!%p288_p2), %s2095_s10, 1  ;;  %vm384_vm1 = vcmask (!%p288_p2), 15360   ;;  %vm2031_vm2 = vcmask (!%p288_p2), 64512  }
   0x6   : > { %291 = sbr.rel (%p288_p2) target bundleno = 1233 (0x4d1), region = 56  ;;  %2380 = vmatprep.subr.msk.mxu0 (!%p288_p2), %vm433_vm0, %v350_v0  ;;  %v351_v49 = vld [vmem:[%s3074_s3] sm:$0x3] (!%p288_p2) }
   0x7   : > { %2381 = vmatpush3.msk.msra.mxu0 (!%p288_p2), %vm433_vm0, %v350_v0  ;;  %2406 = vmatprep.subr.msk.mxu1 (!%p288_p2), %vm433_vm0, %v351_v49  ;;  %v349_v50 = vld [vmem:[%s3072_s1] sm:$0x3] (!%p288_p2) }
   0x8   : > { %2407 = vmatpush3.msk.msra.mxu1 (!%p288_p2), %vm433_vm0, %v351_v49  ;;  %v1007_v51 = vld [vmem:[%s3076_s5] sm:$0x3] (!%p288_p2) }
   0x9   : > { %2432 = vmatprep.subr.msk.mxu1 (!%p288_p2), %vm433_vm0, %v349_v50  ;;  %2458 = vmatprep.subr.msk.mxu0 (!%p288_p2), %vm433_vm0, %v1007_v51 }
   0xd   : > { %s3082_s10 = smov (!%p323_p3, %s2095_s10), 1 }
   0xe   : > { %s2242_s13 = sshll.u32 %s3082_s10, 7  ;;  %s2243_s12 = sshll.u32 %s3082_s10, 6 }
   0xf   : > { %s2705_s16 = scalar_lea.vmem %s3071_s0, %s2242_s13  ;;  %s3050_s15 = scalar_lea.vmem %s3080_s9, %s2243_s12 }
  0x10   : > { %v2708_v1 = vld [vmem:[%s2705_s16] sm:$0xff]  ;;  %v2711_v2 = vld [vmem:[%s2705_s16 + $0x8] sm:$0xff]  ;;  %v2714_v3 = vld [vmem:[%s2705_s16 + $0x10] sm:$0xff] }
  0x11   : > { %v352_v4 = vmul.f32 0.1, %v2708_v1  ;;  %v353_v5 = vmul.f32 0.1, %v2711_v2  ;;  %v354_v6 = vmul.f32 0.1, %v2714_v3 }
  0x12   : > { %v2720_v7 = vld [vmem:[%s2705_s16 + $0x18] sm:$0xff]  ;;  %v2723_v8 = vld [vmem:[%s2705_s16 + $0x20] sm:$0xff]  ;;  %v2730_v13 = vld [vmem:[%s2705_s16 + $0x28] sm:$0xff] }
  0x13   : > { %v368_v9 = vmax.f32 %v2708_v1, %v352_v4  ;;  %v369_v10 = vmax.f32 %v2711_v2, %v353_v5  ;;  %v370_v11 = vmax.f32 %v2714_v3, %v354_v6  ;;  %v355_v12 = vmul.f32 0.1, %v2720_v7  ;;  %v2734_v15 = vld [vmem:[%s2705_s16 + $0x30] sm:$0xff]  ;;  %v2744_v20 = vld [vmem:[%s2705_s16 + $0x38] sm:$0xff]  ;;  %v2747_v21 = vld [vmem:[%s2705_s16 + $0x40] sm:$0xff] }
  0x14   : > { %v356_v14 = vmul.f32 0.1, %v2723_v8  ;;  %v357_v17 = vmul.f32 0.1, %v2730_v13  ;;  %v358_v19 = vmul.f32 0.1, %v2734_v15 }
  0x15   : > { %2382 = vmatprep.mubr.msk.f32.mxu0 %vm384_vm1, %v368_v9  ;;  %v371_v16 = vmax.f32 %v2720_v7, %v355_v12  ;;  %v359_v23 = vmul.f32 0.1, %v2744_v20  ;;  %v360_v25 = vmul.f32 0.1, %v2747_v21  ;;  %v2756_v26 = vld [vmem:[%s2705_s16 + $0x48] sm:$0xff]  ;;  %v2759_v27 = vld [vmem:[%s2705_s16 + $0x50] sm:$0xff] }
  0x16   : > { %2383 = vmatmul.mubr.msk.f32.vlgmr.msra.gmra.mrb[0].mxu0 %vm384_vm1, %v369_v10  ;;  %v372_v18 = vmax.f32 %v2723_v8, %v356_v14  ;;  %v373_v22 = vmax.f32 %v2730_v13, %v357_v17  ;;  %v374_v24 = vmax.f32 %v2734_v15, %v358_v19  ;;  %v361_v29 = vmul.f32 0.1, %v2756_v26  ;;  %v2768_v32 = vld [vmem:[%s2705_s16 + $0x58] sm:$0xff]  ;;  %v2771_v33 = vld [vmem:[%s2705_s16 + $0x60] sm:$0xff]  ;;  %v2780_v38 = vld [vmem:[%s2705_s16 + $0x68] sm:$0xff] }
  0x17   : > { %2385 = vmatprep.mubr.msk.f32.mxu0 %vm384_vm1, %v370_v11  ;;  %v375_v28 = vmax.f32 %v2744_v20, %v359_v23  ;;  %v376_v30 = vmax.f32 %v2747_v21, %v360_v25  ;;  %v362_v31 = vmul.f32 0.1, %v2759_v27  ;;  %v363_v35 = vmul.f32 0.1, %v2768_v32  ;;  %v2783_v39 = vld [vmem:[%s2705_s16 + $0x70] sm:$0xff]  ;;  %v2792_v44 = vld [vmem:[%s2705_s16 + $0x78] sm:$0xff]  ;;  %2459 = vmatpush3.msk.msra.mxu0 %vm433_vm0, %v1007_v51 }
  0x18   : > { %v377_v34 = vmax.f32 %v2756_v26, %v361_v29  ;;  %v364_v37 = vmul.f32 0.1, %v2771_v33  ;;  %v365_v41 = vmul.f32 0.1, %v2780_v38  ;;  %v366_v43 = vmul.f32 0.1, %v2783_v39 }
  0x19   : > { %v378_v36 = vmax.f32 %v2759_v27, %v362_v31  ;;  %v379_v40 = vmax.f32 %v2768_v32, %v363_v35  ;;  %v367_v46 = vmul.f32 0.1, %v2792_v44 }
  0x1a   : > { %2386 = vmatmul.mubr.msk.f32.gmra.mrb[2].mxu0 %vm384_vm1, %v371_v16  ;;  %v380_v42 = vmax.f32 %v2771_v33, %v364_v37  ;;  %v381_v45 = vmax.f32 %v2780_v38, %v365_v41  ;;  %v382_v47 = vmax.f32 %v2783_v39, %v366_v43 }
  0x1b   : > { %2388 = vmatprep.mubr.msk.f32.mxu0 %vm384_vm1, %v372_v18  ;;  %v383_v48 = vmax.f32 %v2792_v44, %v367_v46 }
  0x1e   : > { %2389 = vmatmul.mubr.msk.f32.gmra.mrb[4].mxu0 %vm384_vm1, %v373_v22 }
  0x1f   : > { %2391 = vmatprep.mubr.msk.f32.mxu0 %vm384_vm1, %v374_v24 }
  0x22   : > { %2392 = vmatmul.mubr.msk.f32.gmra.mrb[6].mxu0 %vm384_vm1, %v375_v28 }
  0x23   : > { %2394 = vmatprep.mubr.msk.f32.mxu0 %vm384_vm1, %v376_v30 }
  0x26   : > { %2395 = vmatmul.mubr.msk.f32.gmra.mrb[8].mxu0 %vm384_vm1, %v377_v34 }
  0x27   : > { %2397 = vmatprep.mubr.msk.f32.mxu0 %vm384_vm1, %v378_v36 }
  0x2a   : > { %2398 = vmatmul.mubr.msk.f32.gmra.mrb[10].mxu0 %vm384_vm1, %v379_v40 }
  0x2b   : > { %2400 = vmatprep.mubr.msk.f32.mxu0 %vm384_vm1, %v380_v42 }
  0x2e   : > { %2401 = vmatmul.mubr.msk.f32.gmra.mrb[12].mxu0 %vm384_vm1, %v381_v45 }
  0x2f   : > { %2403 = vmatprep.mubr.msk.f32.mxu0 %vm384_vm1, %v382_v47 }
  0x32   : > { %2404 = vmatmul.mubr.msk.f32.gmra.mrb[14].mxu0 %vm384_vm1, %v383_v48 }
  0xe9   : > { %v2384_v52 = vpop.f32.mrb[0].mxu0 }
  0xea   : > { %v583_v53 = vmul.f32 0.1, %v2384_v52  ;;  %v503_v54 = vpop.f32.mrb[1].mxu0 }
  0xeb   : > { %v582_v55 = vmul.f32 0.1, %v503_v54 }
  0xec   : > { %v599_v58 = vmax.f32 %v2384_v52, %v583_v53 }
  0xed   : > { %v2387_v56 = vpop.f32.mrb[2].mxu0  ;;  %v598_v57 = vmax.f32 %v503_v54, %v582_v55 }
  0xee   : > { %v585_v59 = vmul.f32 0.1, %v2387_v56  ;;  %v513_v60 = vpop.f32.mrb[3].mxu0 }
  0xef   : > { %v584_v61 = vmul.f32 0.1, %v513_v60  ;;  %2408 = vmatprep.mubr.msk.f32.mxu1 %vm384_vm1, %v598_v57 }
  0xf0   : > { %2409 = vmatmul.mubr.msk.f32.vlgmr.msra.gmra.mrb[0].mxu1 %vm384_vm1, %v599_v58  ;;  %v601_v0 = vmax.f32 %v2387_v56, %v585_v59 }
  0xf1   : > { %v600_v62 = vmax.f32 %v513_v60, %v584_v61  ;;  %2433 = vmatpush3.msk.msra.mxu1 %vm433_vm0, %v349_v50  ;;  %v2390_v63 = vpop.f32.mrb[4].mxu0 }
  0xf2   : > { %v587_v4 = vmul.f32 0.1, %v2390_v63  ;;  %v523_v5 = vpop.f32.mrb[5].mxu0 }
  0xf3   : > { %v586_v6 = vmul.f32 0.1, %v523_v5  ;;  %2411 = vmatprep.mubr.msk.f32.mxu1 %vm384_vm1, %v600_v62 }
  0xf4   : > { %2412 = vmatmul.mubr.msk.f32.gmra.mrb[2].mxu1 %vm384_vm1, %v601_v0  ;;  %v603_v11 = vmax.f32 %v2390_v63, %v587_v4 }
  0xf5   : > { %v602_v9 = vmax.f32 %v523_v5, %v586_v6  ;;  %v2393_v10 = vpop.f32.mrb[6].mxu0 }
  0xf6   : > { %v589_v12 = vmul.f32 0.1, %v2393_v10  ;;  %v533_v14 = vpop.f32.mrb[7].mxu0 }
  0xf7   : > { %v588_v16 = vmul.f32 0.1, %v533_v14  ;;  %2414 = vmatprep.mubr.msk.f32.mxu1 %vm384_vm1, %v602_v9 }
  0xf8   : > { %2415 = vmatmul.mubr.msk.f32.gmra.mrb[4].mxu1 %vm384_vm1, %v603_v11  ;;  %v605_v19 = vmax.f32 %v2393_v10, %v589_v12 }
  0xf9   : > { %v604_v17 = vmax.f32 %v533_v14, %v588_v16  ;;  %v2396_v18 = vpop.f32.mrb[8].mxu0 }
  0xfa   : > { %v591_v22 = vmul.f32 0.1, %v2396_v18  ;;  %v543_v23 = vpop.f32.mrb[9].mxu0 }
  0xfb   : > { %v590_v24 = vmul.f32 0.1, %v543_v23  ;;  %2417 = vmatprep.mubr.msk.f32.mxu1 %vm384_vm1, %v604_v17 }
  0xfc   : > { %2418 = vmatmul.mubr.msk.f32.gmra.mrb[6].mxu1 %vm384_vm1, %v605_v19  ;;  %v607_v29 = vmax.f32 %v2396_v18, %v591_v22 }
  0xfd   : > { %v606_v25 = vmax.f32 %v543_v23, %v590_v24  ;;  %v2399_v28 = vpop.f32.mrb[10].mxu0 }
  0xfe   : > { %v593_v30 = vmul.f32 0.1, %v2399_v28  ;;  %v553_v31 = vpop.f32.mrb[11].mxu0 }
  0xff   : > { %v592_v34 = vmul.f32 0.1, %v553_v31  ;;  %2420 = vmatprep.mubr.msk.f32.mxu1 %vm384_vm1, %v606_v25 }
 0x100   : > { %2421 = vmatmul.mubr.msk.f32.gmra.mrb[8].mxu1 %vm384_vm1, %v607_v29  ;;  %v609_v37 = vmax.f32 %v2399_v28, %v593_v30 }
 0x101   : > { %v608_v35 = vmax.f32 %v553_v31, %v592_v34  ;;  %v2402_v36 = vpop.f32.mrb[12].mxu0  ;;  %v1006_v34 = vld [vmem:[%s3075_s4] sm:$0x3] }
 0x102   : > { %v595_v40 = vmul.f32 0.1, %v2402_v36  ;;  %v563_v41 = vpop.f32.mrb[13].mxu0 }
 0x103   : > { %v594_v42 = vmul.f32 0.1, %v563_v41  ;;  %2423 = vmatprep.mubr.msk.f32.mxu1 %vm384_vm1, %v608_v35  ;;  %v1693_v35 = vld [vmem:[%s3078_s7] sm:$0x3] }
 0x104   : > { %2424 = vmatmul.mubr.msk.f32.gmra.mrb[10].mxu1 %vm384_vm1, %v609_v37  ;;  %v611_v46 = vmax.f32 %v2402_v36, %v595_v40  ;;  %2536 = vmatprep.subr.msk.mxu1 %vm433_vm0, %v1693_v35 }
 0x105   : > { %v610_v43 = vmax.f32 %v563_v41, %v594_v42  ;;  %v2405_v45 = vpop.f32.mrb[14].mxu0 }
 0x106   : > { %v597_v47 = vmul.f32 0.1, %v2405_v45  ;;  %v573_v48 = vpop.f32.mrb[15].mxu0 }
 0x107   : > { %v596_v49 = vmul.f32 0.1, %v573_v48  ;;  %2426 = vmatprep.mubr.msk.f32.mxu1 %vm384_vm1, %v610_v43 }
 0x108   : > { %2427 = vmatmul.mubr.msk.f32.gmra.mrb[12].mxu1 %vm384_vm1, %v611_v46  ;;  %v613_v51 = vmax.f32 %v2405_v45, %v597_v47 }
 0x109   : > { %v612_v50 = vmax.f32 %v573_v48, %v596_v49 }
 0x10b   : > { %2429 = vmatprep.mubr.msk.f32.mxu1 %vm384_vm1, %v612_v50 }
 0x10c   : > { %2430 = vmatmul.mubr.msk.f32.gmra.mrb[14].mxu1 %vm384_vm1, %v613_v51 }
 0x10d   : > { %2434 = vmatprep.mubr.msk.f32.mxu1 %vm384_vm1, %v2708_v1  ;;  %v1008_v1 = vld [vmem:[%s3077_s6] sm:$0x3] }
 0x10e   : > { %2484 = vmatprep.subr.msk.mxu0 %vm433_vm0, %v1008_v1 }
 0x110   : > { %2435 = vmatmul.mubr.msk.f32.vlgmr.msra.gmra.mrb[0].mxu1 %vm384_vm1, %v2711_v2 }
 0x111   : > { %2437 = vmatprep.mubr.msk.f32.mxu1 %vm384_vm1, %v2714_v3  ;;  %2537 = vmatpush3.msk.msra.mxu1 %vm433_vm0, %v1693_v35 }
 0x114   : > { %2438 = vmatmul.mubr.msk.f32.gmra.mrb[2].mxu1 %vm384_vm1, %v2720_v7 }
 0x115   : > { %2440 = vmatprep.mubr.msk.f32.mxu1 %vm384_vm1, %v2723_v8 }
 0x118   : > { %2441 = vmatmul.mubr.msk.f32.gmra.mrb[4].mxu1 %vm384_vm1, %v2730_v13 }
 0x119   : > { %2443 = vmatprep.mubr.msk.f32.mxu1 %vm384_vm1, %v2734_v15 }
 0x11c   : > { %2444 = vmatmul.mubr.msk.f32.gmra.mrb[6].mxu1 %vm384_vm1, %v2744_v20 }
 0x11d   : > { %2446 = vmatprep.mubr.msk.f32.mxu1 %vm384_vm1, %v2747_v21 }
 0x120   : > { %2447 = vmatmul.mubr.msk.f32.gmra.mrb[8].mxu1 %vm384_vm1, %v2756_v26 }
 0x121   : > { %2449 = vmatprep.mubr.msk.f32.mxu1 %vm384_vm1, %v2759_v27 }
 0x124   : > { %2450 = vmatmul.mubr.msk.f32.gmra.mrb[10].mxu1 %vm384_vm1, %v2768_v32 }
 0x125   : > { %2452 = vmatprep.mubr.msk.f32.mxu1 %vm384_vm1, %v2771_v33 }
 0x128   : > { %2453 = vmatmul.mubr.msk.f32.gmra.mrb[12].mxu1 %vm384_vm1, %v2780_v38 }
 0x129   : > { %2455 = vmatprep.mubr.msk.f32.mxu1 %vm384_vm1, %v2783_v39 }
 0x12c   : > { %2456 = vmatmul.mubr.msk.f32.gmra.mrb[14].mxu1 %vm384_vm1, %v2792_v44 }
 0x1e3   : > { %v2870_v2 = vpop.f32.mrb[0].mxu1 }
 0x1e4   : > { %v1010_v3 = vmul.f32 0.1, %v2870_v2  ;;  %v2873_v7 = vpop.f32.mrb[1].mxu1 }
 0x1e5   : > { %v1009_v8 = vmul.f32 0.1, %v2873_v7 }
 0x1e6   : > { %v1026_v20 = vmax.f32 %v2870_v2, %v1010_v3 }
 0x1e7   : > { %v1025_v13 = vmax.f32 %v2873_v7, %v1009_v8  ;;  %v2877_v15 = vpop.f32.mrb[2].mxu1 }
 0x1e8   : > { %v1012_v21 = vmul.f32 0.1, %v2877_v15  ;;  %v2881_v26 = vpop.f32.mrb[3].mxu1 }
 0x1e9   : > { %v1011_v27 = vmul.f32 0.1, %v2881_v26  ;;  %2460 = vmatprep.mubr.msk.f32.mxu0 %vm384_vm1, %v1025_v13 }
 0x1ea   : > { %2461 = vmatmul.mubr.msk.f32.vlgmr.msra.gmra.mrb[16].mxu0 %vm384_vm1, %v1026_v20  ;;  %v1028_v38 = vmax.f32 %v2877_v15, %v1012_v21 }
 0x1eb   : > { %v1027_v32 = vmax.f32 %v2881_v26, %v1011_v27  ;;  %v2887_v33 = vpop.f32.mrb[4].mxu1  ;;  %2485 = vmatpush3.msk.msra.mxu0 %vm433_vm0, %v1008_v1 }
 0x1ec   : > { %v1014_v39 = vmul.f32 0.1, %v2887_v33  ;;  %v2892_v44 = vpop.f32.mrb[5].mxu1  ;;  %2510 = vmatprep.subr.msk.mxu0 %vm433_vm0, %v1006_v34 }
 0x1ed   : > { %v1013_v52 = vmul.f32 0.1, %v2892_v44  ;;  %2463 = vmatprep.mubr.msk.f32.mxu0 %vm384_vm1, %v1027_v32 }
 0x1ee   : > { %2464 = vmatmul.mubr.msk.f32.gmra.mrb[18].mxu0 %vm384_vm1, %v1028_v38  ;;  %v1030_v55 = vmax.f32 %v2887_v33, %v1014_v39 }
 0x1ef   : > { %v1029_v53 = vmax.f32 %v2892_v44, %v1013_v52  ;;  %v2898_v54 = vpop.f32.mrb[6].mxu1 }
 0x1f0   : > { %v1016_v56 = vmul.f32 0.1, %v2898_v54  ;;  %v2902_v57 = vpop.f32.mrb[7].mxu1 }
 0x1f1   : > { %v1015_v58 = vmul.f32 0.1, %v2902_v57  ;;  %2466 = vmatprep.mubr.msk.f32.mxu0 %vm384_vm1, %v1029_v53 }
 0x1f2   : > { %2467 = vmatmul.mubr.msk.f32.gmra.mrb[20].mxu0 %vm384_vm1, %v1030_v55  ;;  %v1032_v61 = vmax.f32 %v2898_v54, %v1016_v56 }
 0x1f3   : > { %v1031_v59 = vmax.f32 %v2902_v57, %v1015_v58  ;;  %v2908_v60 = vpop.f32.mrb[8].mxu1 }
 0x1f4   : > { %v1018_v62 = vmul.f32 0.1, %v2908_v60  ;;  %v2912_v63 = vpop.f32.mrb[9].mxu1 }
 0x1f5   : > { %v1017_v0 = vmul.f32 0.1, %v2912_v63  ;;  %2469 = vmatprep.mubr.msk.f32.mxu0 %vm384_vm1, %v1031_v59 }
 0x1f6   : > { %2470 = vmatmul.mubr.msk.f32.gmra.mrb[22].mxu0 %vm384_vm1, %v1032_v61  ;;  %v1034_v6 = vmax.f32 %v2908_v60, %v1018_v62 }
 0x1f7   : > { %v1033_v4 = vmax.f32 %v2912_v63, %v1017_v0  ;;  %v2918_v5 = vpop.f32.mrb[10].mxu1 }
 0x1f8   : > { %v1020_v9 = vmul.f32 0.1, %v2918_v5  ;;  %v2922_v10 = vpop.f32.mrb[11].mxu1 }
 0x1f9   : > { %v1019_v11 = vmul.f32 0.1, %v2922_v10  ;;  %2472 = vmatprep.mubr.msk.f32.mxu0 %vm384_vm1, %v1033_v4 }
 0x1fa   : > { %2473 = vmatmul.mubr.msk.f32.gmra.mrb[24].mxu0 %vm384_vm1, %v1034_v6  ;;  %v1036_v16 = vmax.f32 %v2918_v5, %v1020_v9 }
 0x1fb   : > { %v1035_v12 = vmax.f32 %v2922_v10, %v1019_v11  ;;  %v2928_v14 = vpop.f32.mrb[12].mxu1 }
 0x1fc   : > { %v1022_v17 = vmul.f32 0.1, %v2928_v14  ;;  %v2932_v18 = vpop.f32.mrb[13].mxu1 }
 0x1fd   : > { %v1021_v19 = vmul.f32 0.1, %v2932_v18  ;;  %2475 = vmatprep.mubr.msk.f32.mxu0 %vm384_vm1, %v1035_v12 }
 0x1fe   : > { %2476 = vmatmul.mubr.msk.f32.gmra.mrb[26].mxu0 %vm384_vm1, %v1036_v16  ;;  %v1038_v24 = vmax.f32 %v2928_v14, %v1022_v17 }
 0x1ff   : > { %v1037_v22 = vmax.f32 %v2932_v18, %v1021_v19  ;;  %v2938_v23 = vpop.f32.mrb[14].mxu1 }
 0x200   : > { %v1024_v25 = vmul.f32 0.1, %v2938_v23  ;;  %v2942_v28 = vpop.f32.mrb[15].mxu1 }
 0x201   : > { %v1023_v29 = vmul.f32 0.1, %v2942_v28  ;;  %2478 = vmatprep.mubr.msk.f32.mxu0 %vm384_vm1, %v1037_v22 }
 0x202   : > { %2479 = vmatmul.mubr.msk.f32.gmra.mrb[28].mxu0 %vm384_vm1, %v1038_v24  ;;  %v1040_v31 = vmax.f32 %v2938_v23, %v1024_v25 }
 0x203   : > { %v1039_v30 = vmax.f32 %v2942_v28, %v1023_v29 }
 0x205   : > { %2481 = vmatprep.mubr.msk.f32.mxu0 %vm384_vm1, %v1039_v30 }
 0x206   : > { %2482 = vmatmul.mubr.msk.f32.gmra.mrb[30].mxu0 %vm384_vm1, %v1040_v31 }
 0x2bd   : > { %v2462_v36 = vpop.f32.mrb[16].mxu0 }
 0x2be   : > { %v1238_v37 = vmul.f32 0.1, %v2462_v36  ;;  %v1158_v40 = vpop.f32.mrb[17].mxu0 }
 0x2bf   : > { %v1237_v41 = vmul.f32 0.1, %v1158_v40 }
 0x2c0   : > { %v1254_v45 = vmax.f32 %v2462_v36, %v1238_v37 }
 0x2c1   : > { %v1253_v42 = vmax.f32 %v1158_v40, %v1237_v41  ;;  %v2465_v43 = vpop.f32.mrb[18].mxu0 }
 0x2c2   : > { %v1240_v46 = vmul.f32 0.1, %v2465_v43  ;;  %v1168_v47 = vpop.f32.mrb[19].mxu0 }
 0x2c3   : > { %v1239_v48 = vmul.f32 0.1, %v1168_v47  ;;  %2486 = vmatprep.mubr.msk.f32.mxu0 %vm384_vm1, %v1253_v42 }
 0x2c4   : > { %2487 = vmatmul.mubr.msk.f32.vlgmr.msra.gmra.mrb[32].mxu0 %vm384_vm1, %v1254_v45  ;;  %v1256_v51 = vmax.f32 %v2465_v43, %v1240_v46 }
 0x2c5   : > { %v1255_v49 = vmax.f32 %v1168_v47, %v1239_v48  ;;  %2511 = vmatpush3.msk.msra.mxu0 %vm433_vm0, %v1006_v34  ;;  %v2468_v50 = vpop.f32.mrb[20].mxu0 }
 0x2c6   : > { %v1242_v1 = vmul.f32 0.1, %v2468_v50  ;;  %v1178_v3 = vpop.f32.mrb[21].mxu0 }
 0x2c7   : > { %v1241_v8 = vmul.f32 0.1, %v1178_v3  ;;  %2489 = vmatprep.mubr.msk.f32.mxu0 %vm384_vm1, %v1255_v49 }
 0x2c8   : > { %2490 = vmatmul.mubr.msk.f32.gmra.mrb[34].mxu0 %vm384_vm1, %v1256_v51  ;;  %v1258_v21 = vmax.f32 %v2468_v50, %v1242_v1 }
 0x2c9   : > { %v1257_v13 = vmax.f32 %v1178_v3, %v1241_v8  ;;  %v2471_v20 = vpop.f32.mrb[22].mxu0 }
 0x2ca   : > { %v1244_v27 = vmul.f32 0.1, %v2471_v20  ;;  %v1188_v32 = vpop.f32.mrb[23].mxu0 }
 0x2cb   : > { %v1243_v38 = vmul.f32 0.1, %v1188_v32  ;;  %2492 = vmatprep.mubr.msk.f32.mxu0 %vm384_vm1, %v1257_v13 }
 0x2cc   : > { %2493 = vmatmul.mubr.msk.f32.gmra.mrb[36].mxu0 %vm384_vm1, %v1258_v21  ;;  %v1260_v53 = vmax.f32 %v2471_v20, %v1244_v27 }
 0x2cd   : > { %v1259_v39 = vmax.f32 %v1188_v32, %v1243_v38  ;;  %v2474_v52 = vpop.f32.mrb[24].mxu0 }
 0x2ce   : > { %v1246_v55 = vmul.f32 0.1, %v2474_v52  ;;  %v1198_v56 = vpop.f32.mrb[25].mxu0 }
 0x2cf   : > { %v1245_v58 = vmul.f32 0.1, %v1198_v56  ;;  %2495 = vmatprep.mubr.msk.f32.mxu0 %vm384_vm1, %v1259_v39 }
 0x2d0   : > { %2496 = vmatmul.mubr.msk.f32.gmra.mrb[38].mxu0 %vm384_vm1, %v1260_v53  ;;  %v1262_v62 = vmax.f32 %v2474_v52, %v1246_v55 }
 0x2d1   : > { %v1261_v59 = vmax.f32 %v1198_v56, %v1245_v58  ;;  %v2477_v61 = vpop.f32.mrb[26].mxu0 }
 0x2d2   : > { %v1248_v0 = vmul.f32 0.1, %v2477_v61  ;;  %v1208_v4 = vpop.f32.mrb[27].mxu0 }
 0x2d3   : > { %v1247_v6 = vmul.f32 0.1, %v1208_v4  ;;  %2498 = vmatprep.mubr.msk.f32.mxu0 %vm384_vm1, %v1261_v59 }
 0x2d4   : > { %2499 = vmatmul.mubr.msk.f32.gmra.mrb[40].mxu0 %vm384_vm1, %v1262_v62  ;;  %v1264_v12 = vmax.f32 %v2477_v61, %v1248_v0 }
 0x2d5   : > { %v1263_v9 = vmax.f32 %v1208_v4, %v1247_v6  ;;  %v2480_v11 = vpop.f32.mrb[28].mxu0 }
 0x2d6   : > { %v1250_v16 = vmul.f32 0.1, %v2480_v11  ;;  %v1218_v17 = vpop.f32.mrb[29].mxu0 }
 0x2d7   : > { %v1249_v19 = vmul.f32 0.1, %v1218_v17  ;;  %2501 = vmatprep.mubr.msk.f32.mxu0 %vm384_vm1, %v1263_v9 }
 0x2d8   : > { %2502 = vmatmul.mubr.msk.f32.gmra.mrb[42].mxu0 %vm384_vm1, %v1264_v12  ;;  %v1266_v25 = vmax.f32 %v2480_v11, %v1250_v16 }
 0x2d9   : > { %v1265_v22 = vmax.f32 %v1218_v17, %v1249_v19  ;;  %v2483_v24 = vpop.f32.mrb[30].mxu0 }
 0x2da   : > { %v1252_v29 = vmul.f32 0.1, %v2483_v24  ;;  %v1228_v30 = vpop.f32.mrb[31].mxu0 }
 0x2db   : > { %v1251_v31 = vmul.f32 0.1, %v1228_v30  ;;  %2504 = vmatprep.mubr.msk.f32.mxu0 %vm384_vm1, %v1265_v22 }
 0x2dc   : > { %2505 = vmatmul.mubr.msk.f32.gmra.mrb[44].mxu0 %vm384_vm1, %v1266_v25  ;;  %v1268_v35 = vmax.f32 %v2483_v24, %v1252_v29 }
 0x2dd   : > { %v1267_v34 = vmax.f32 %v1228_v30, %v1251_v31 }
 0x2df   : > { %2507 = vmatprep.mubr.msk.f32.mxu0 %vm384_vm1, %v1267_v34 }
 0x2e0   : > { %2508 = vmatmul.mubr.msk.f32.gmra.mrb[46].mxu0 %vm384_vm1, %v1268_v35 }
 0x2e1   : > { %2512 = vmatprep.mubr.msk.f32.mxu0 %vm384_vm1, %v2873_v7 }
 0x2e4   : > { %2513 = vmatmul.mubr.msk.f32.vlgmr.msra.gmra.mrb[32].mxu0 %vm384_vm1, %v2870_v2  ;;  %v1694_v2 = vld [vmem:[%s3079_s8] sm:$0x3] }
 0x2e5   : > { %2515 = vmatprep.mubr.msk.f32.mxu0 %vm384_vm1, %v2881_v26  ;;  %2562 = vmatprep.subr.msk.mxu1 %vm433_vm0, %v1694_v2 }
 0x2e8   : > { %2516 = vmatmul.mubr.msk.f32.gmra.mrb[34].mxu0 %vm384_vm1, %v2877_v15 }
 0x2e9   : > { %2518 = vmatprep.mubr.msk.f32.mxu0 %vm384_vm1, %v2892_v44 }
 0x2ec   : > { %2519 = vmatmul.mubr.msk.f32.gmra.mrb[36].mxu0 %vm384_vm1, %v2887_v33 }
 0x2ed   : > { %2521 = vmatprep.mubr.msk.f32.mxu0 %vm384_vm1, %v2902_v57 }
 0x2f0   : > { %2522 = vmatmul.mubr.msk.f32.gmra.mrb[38].mxu0 %vm384_vm1, %v2898_v54 }
 0x2f1   : > { %2524 = vmatprep.mubr.msk.f32.mxu0 %vm384_vm1, %v2912_v63 }
 0x2f4   : > { %2525 = vmatmul.mubr.msk.f32.gmra.mrb[40].mxu0 %vm384_vm1, %v2908_v60 }
 0x2f5   : > { %2527 = vmatprep.mubr.msk.f32.mxu0 %vm384_vm1, %v2922_v10 }
 0x2f8   : > { %2528 = vmatmul.mubr.msk.f32.gmra.mrb[42].mxu0 %vm384_vm1, %v2918_v5 }
 0x2f9   : > { %2530 = vmatprep.mubr.msk.f32.mxu0 %vm384_vm1, %v2932_v18 }
 0x2fc   : > { %2531 = vmatmul.mubr.msk.f32.gmra.mrb[44].mxu0 %vm384_vm1, %v2928_v14 }
 0x2fd   : > { %2533 = vmatprep.mubr.msk.f32.mxu0 %vm384_vm1, %v2942_v28 }
 0x300   : > { %2534 = vmatmul.mubr.msk.f32.gmra.mrb[46].mxu0 %vm384_vm1, %v2938_v23 }
 0x3b7   : > { %v2514_v7 = vpop.f32.mrb[32].mxu0 }
 0x3b8   : > { %v1662_v15 = vmul.f32 0.1, %v2514_v7  ;;  %v1582_v26 = vpop.f32.mrb[33].mxu0 }
 0x3b9   : > { %v1661_v33 = vmul.f32 0.1, %v1582_v26 }
 0x3ba   : > { %v1678_v57 = vmax.f32 %v2514_v7, %v1662_v15 }
 0x3bb   : > { %v1677_v44 = vmax.f32 %v1582_v26, %v1661_v33  ;;  %v2517_v54 = vpop.f32.mrb[34].mxu0 }
 0x3bc   : > { %v1664_v60 = vmul.f32 0.1, %v2517_v54  ;;  %v1592_v63 = vpop.f32.mrb[35].mxu0 }
 0x3bd   : > { %v1663_v5 = vmul.f32 0.1, %v1592_v63  ;;  %2538 = vmatprep.mubr.msk.f32.mxu1 %vm384_vm1, %v1677_v44 }
 0x3be   : > { %2539 = vmatmul.mubr.msk.f32.vlgmr.msra.gmra.mrb[16].mxu1 %vm384_vm1, %v1678_v57  ;;  %v1680_v18 = vmax.f32 %v2517_v54, %v1664_v60 }
 0x3bf   : > { %v1679_v10 = vmax.f32 %v1592_v63, %v1663_v5  ;;  %2563 = vmatpush3.msk.msra.mxu1 %vm433_vm0, %v1694_v2  ;;  %v2520_v14 = vpop.f32.mrb[36].mxu0 }
 0x3c0   : > { %v1666_v23 = vmul.f32 0.1, %v2520_v14  ;;  %v1602_v28 = vpop.f32.mrb[37].mxu0 }
 0x3c1   : > { %v1665_v36 = vmul.f32 0.1, %v1602_v28  ;;  %2541 = vmatprep.mubr.msk.f32.mxu1 %vm384_vm1, %v1679_v10 }
 0x3c2   : > { %2542 = vmatmul.mubr.msk.f32.gmra.mrb[18].mxu1 %vm384_vm1, %v1680_v18  ;;  %v1682_v41 = vmax.f32 %v2520_v14, %v1666_v23 }
 0x3c3   : > { %v1681_v37 = vmax.f32 %v1602_v28, %v1665_v36  ;;  %v2523_v40 = vpop.f32.mrb[38].mxu0 }
 0x3c4   : > { %v1668_v42 = vmul.f32 0.1, %v2523_v40  ;;  %v1612_v43 = vpop.f32.mrb[39].mxu0 }
 0x3c5   : > { %v1667_v45 = vmul.f32 0.1, %v1612_v43  ;;  %2544 = vmatprep.mubr.msk.f32.mxu1 %vm384_vm1, %v1681_v37 }
 0x3c6   : > { %2545 = vmatmul.mubr.msk.f32.gmra.mrb[20].mxu1 %vm384_vm1, %v1682_v41  ;;  %v1684_v48 = vmax.f32 %v2523_v40, %v1668_v42 }
 0x3c7   : > { %v1683_v46 = vmax.f32 %v1612_v43, %v1667_v45  ;;  %v2526_v47 = vpop.f32.mrb[40].mxu0 }
 0x3c8   : > { %v1670_v49 = vmul.f32 0.1, %v2526_v47  ;;  %v1622_v50 = vpop.f32.mrb[41].mxu0 }
 0x3c9   : > { %v1669_v51 = vmul.f32 0.1, %v1622_v50  ;;  %2547 = vmatprep.mubr.msk.f32.mxu1 %vm384_vm1, %v1683_v46 }
 0x3ca   : > { %2548 = vmatmul.mubr.msk.f32.gmra.mrb[22].mxu1 %vm384_vm1, %v1684_v48  ;;  %v1686_v8 = vmax.f32 %v2526_v47, %v1670_v49 }
 0x3cb   : > { %v1685_v1 = vmax.f32 %v1622_v50, %v1669_v51  ;;  %v2529_v3 = vpop.f32.mrb[42].mxu0 }
 0x3cc   : > { %v1672_v13 = vmul.f32 0.1, %v2529_v3  ;;  %v1632_v20 = vpop.f32.mrb[43].mxu0 }
 0x3cd   : > { %v1671_v21 = vmul.f32 0.1, %v1632_v20  ;;  %2550 = vmatprep.mubr.msk.f32.mxu1 %vm384_vm1, %v1685_v1 }
 0x3ce   : > { %2551 = vmatmul.mubr.msk.f32.gmra.mrb[24].mxu1 %vm384_vm1, %v1686_v8  ;;  %v1688_v38 = vmax.f32 %v2529_v3, %v1672_v13 }
 0x3cf   : > { %v1687_v27 = vmax.f32 %v1632_v20, %v1671_v21  ;;  %v2532_v32 = vpop.f32.mrb[44].mxu0 }
 0x3d0   : > { %v1674_v39 = vmul.f32 0.1, %v2532_v32  ;;  %v1642_v52 = vpop.f32.mrb[45].mxu0 }
 0x3d1   : > { %v1673_v53 = vmul.f32 0.1, %v1642_v52  ;;  %2553 = vmatprep.mubr.msk.f32.mxu1 %vm384_vm1, %v1687_v27 }
 0x3d2   : > { %2554 = vmatmul.mubr.msk.f32.gmra.mrb[26].mxu1 %vm384_vm1, %v1688_v38  ;;  %v1690_v58 = vmax.f32 %v2532_v32, %v1674_v39 }
 0x3d3   : > { %v1689_v55 = vmax.f32 %v1642_v52, %v1673_v53  ;;  %v2535_v56 = vpop.f32.mrb[46].mxu0 }
 0x3d4   : > { %v1676_v59 = vmul.f32 0.1, %v2535_v56  ;;  %v1652_v61 = vpop.f32.mrb[47].mxu0 }
 0x3d5   : > { %v1675_v62 = vmul.f32 0.1, %v1652_v61  ;;  %2556 = vmatprep.mubr.msk.f32.mxu1 %vm384_vm1, %v1689_v55 }
 0x3d6   : > { %2557 = vmatmul.mubr.msk.f32.gmra.mrb[28].mxu1 %vm384_vm1, %v1690_v58  ;;  %v1692_v4 = vmax.f32 %v2535_v56, %v1676_v59 }
 0x3d7   : > { %v1691_v0 = vmax.f32 %v1652_v61, %v1675_v62 }
 0x3d9   : > { %2559 = vmatprep.mubr.msk.f32.mxu1 %vm384_vm1, %v1691_v0 }
 0x3da   : > { %2560 = vmatmul.mubr.msk.f32.gmra.mrb[30].mxu1 %vm384_vm1, %v1692_v4 }
 0x3db   : > { %2564 = vmatprep.mubr.msk.f32.mxu1 %vm384_vm1, %v1677_v44 }
 0x3de   : > { %2565 = vmatmul.mubr.msk.f32.vlgmr.msra.gmra.mrb[32].mxu1 %vm384_vm1, %v1678_v57 }
 0x3df   : > { %2567 = vmatprep.mubr.msk.f32.mxu1 %vm384_vm1, %v1679_v10 }
 0x3e2   : > { %2568 = vmatmul.mubr.msk.f32.gmra.mrb[34].mxu1 %vm384_vm1, %v1680_v18 }
 0x3e3   : > { %2570 = vmatprep.mubr.msk.f32.mxu1 %vm384_vm1, %v1681_v37 }
 0x3e6   : > { %2571 = vmatmul.mubr.msk.f32.gmra.mrb[36].mxu1 %vm384_vm1, %v1682_v41 }
 0x3e7   : > { %2573 = vmatprep.mubr.msk.f32.mxu1 %vm384_vm1, %v1683_v46 }
 0x3ea   : > { %2574 = vmatmul.mubr.msk.f32.gmra.mrb[38].mxu1 %vm384_vm1, %v1684_v48 }
 0x3eb   : > { %2576 = vmatprep.mubr.msk.f32.mxu1 %vm384_vm1, %v1685_v1 }
 0x3ee   : > { %2577 = vmatmul.mubr.msk.f32.gmra.mrb[40].mxu1 %vm384_vm1, %v1686_v8 }
 0x3ef   : > { %2579 = vmatprep.mubr.msk.f32.mxu1 %vm384_vm1, %v1687_v27 }
 0x3f2   : > { %2580 = vmatmul.mubr.msk.f32.gmra.mrb[42].mxu1 %vm384_vm1, %v1688_v38 }
 0x3f3   : > { %2582 = vmatprep.mubr.msk.f32.mxu1 %vm384_vm1, %v1689_v55 }
 0x3f6   : > { %2583 = vmatmul.mubr.msk.f32.gmra.mrb[44].mxu1 %vm384_vm1, %v1690_v58 }
 0x3f7   : > { %2585 = vmatprep.mubr.msk.f32.mxu1 %vm384_vm1, %v1691_v0 }
 0x3fa   : > { %2586 = vmatmul.mubr.msk.f32.gmra.mrb[46].mxu1 %vm384_vm1, %v1692_v4 }
 0x491   : > { %v2540_v6 = vpop.f32.mrb[16].mxu1 }
 0x492   : > { %v1812_v9 = vpop.f32.mrb[17].mxu1 }
 0x495   : > { %v2543_v11 = vpop.f32.mrb[18].mxu1 }
 0x496   : > { %v1821_v12 = vpop.f32.mrb[19].mxu1 }
 0x499   : > { %v2546_v16 = vpop.f32.mrb[20].mxu1 }
 0x49a   : > { %v1830_v17 = vpop.f32.mrb[21].mxu1 }
 0x49d   : > { %v2549_v19 = vpop.f32.mrb[22].mxu1 }
 0x49e   : > { %v1839_v22 = vpop.f32.mrb[23].mxu1 }
 0x4a1   : > { %v2552_v24 = vpop.f32.mrb[24].mxu1 }
 0x4a2   : > { %v1848_v25 = vpop.f32.mrb[25].mxu1 }
 0x4a5   : > { %v2555_v29 = vpop.f32.mrb[26].mxu1 }
 0x4a6   : > { %v1857_v30 = vpop.f32.mrb[27].mxu1 }
 0x4a9   : > { %v2558_v31 = vpop.f32.mrb[28].mxu1 }
 0x4aa   : > { %v1866_v34 = vpop.f32.mrb[29].mxu1 }
 0x4ad   : > { %v2561_v35 = vpop.f32.mrb[30].mxu1 }
 0x4ae   : > { %v1875_v2 = vpop.f32.mrb[31].mxu1 }
 0x4b1   : > { %v2566_v7 = vpop.f32.mrb[32].mxu1 }
 0x4b2   : > { %v2023_v15 = vadd.f32 %v2566_v7, %v1812_v9  ;;  %v1952_v26 = vpop.f32.mrb[33].mxu1 }
 0x4b4   : > { %2032 = vst.msk [vmem:[%s3050_s15] sm:$0xff] %vm2031_vm2, %v2023_v15 }
 0x4b5   : > { %v2569_v33 = vpop.f32.mrb[34].mxu1 }
 0x4b6   : > { %v2024_v44 = vadd.f32 %v2569_v33, %v1821_v12  ;;  %v1961_v54 = vpop.f32.mrb[35].mxu1 }
 0x4b8   : > { %2033 = vst.msk [vmem:[%s3050_s15 + $0x8] sm:$0xff] %vm2031_vm2, %v2024_v44 }
 0x4b9   : > { %v2572_v57 = vpop.f32.mrb[36].mxu1 }
 0x4ba   : > { %v2025_v60 = vadd.f32 %v2572_v57, %v1830_v17  ;;  %v1970_v63 = vpop.f32.mrb[37].mxu1 }
 0x4bc   : > { %2034 = vst.msk [vmem:[%s3050_s15 + $0x10] sm:$0xff] %vm2031_vm2, %v2025_v60 }
 0x4bd   : > { %v2575_v5 = vpop.f32.mrb[38].mxu1 }
 0x4be   : > { %v2026_v10 = vadd.f32 %v2575_v5, %v1839_v22  ;;  %v1979_v14 = vpop.f32.mrb[39].mxu1 }
 0x4c0   : > { %2035 = vst.msk [vmem:[%s3050_s15 + $0x18] sm:$0xff] %vm2031_vm2, %v2026_v10 }
 0x4c1   : > { %v2578_v18 = vpop.f32.mrb[40].mxu1 }
 0x4c2   : > { %v2027_v23 = vadd.f32 %v2578_v18, %v1848_v25  ;;  %v1988_v28 = vpop.f32.mrb[41].mxu1 }
 0x4c4   : > { %2036 = vst.msk [vmem:[%s3050_s15 + $0x20] sm:$0xff] %vm2031_vm2, %v2027_v23 }
 0x4c5   : > { %v2581_v36 = vpop.f32.mrb[42].mxu1 }
 0x4c6   : > { %v2028_v37 = vadd.f32 %v2581_v36, %v1857_v30  ;;  %v1997_v40 = vpop.f32.mrb[43].mxu1 }
 0x4c8   : > { %2037 = vst.msk [vmem:[%s3050_s15 + $0x28] sm:$0xff] %vm2031_vm2, %v2028_v37 }
 0x4c9   : > { %v2584_v41 = vpop.f32.mrb[44].mxu1 }
 0x4ca   : > { %v2029_v42 = vadd.f32 %v2584_v41, %v1866_v34  ;;  %v2006_v43 = vpop.f32.mrb[45].mxu1 }
 0x4cc   : > { %2038 = vst.msk [vmem:[%s3050_s15 + $0x30] sm:$0xff] %vm2031_vm2, %v2029_v42 }
 0x4cd   : > { %v2587_v45 = vpop.f32.mrb[46].mxu1 }
 0x4ce   : > { %v2030_v46 = vadd.f32 %v2587_v45, %v1875_v2  ;;  %v2015_v47 = vpop.f32.mrb[47].mxu1 }
 0x4d0   : > { %2039 = vst.msk [vmem:[%s3050_s15 + $0x38] sm:$0xff] %vm2031_vm2, %v2030_v46 }
 0x4d1 PF: > { %s19_s30 = sadd.s32 1, %s2634_s30  }
 0x4d2   : > { %p16_p4 = scmp.ge.s32.totalorder %s19_s30, 4  }
 0x4d4   :  { %18 = sbr.rel (!%p16_p4) target bundleno = 1 (0x1), region = 86 }

</bundles_post_ra>
